<compile_context>
chip_gen: v6e
topology: v6e:2x2x1
jax: 0.10.0
libtpu: 0.0.40
codegen_flags: <defaults>
</compile_context>

<pallas_src>
import numpy as np
import jax
import jax.numpy as jnp
from jax import lax
from jax.experimental import pallas as pl
from jax.experimental.pallas import tpu as pltpu

EPS = 1e-5


# ----------------------------- Pallas kernel -------------------------------

def _pad_rows(Wp):
    # Pad depth (flattened rows) above/below the image: multiple of 8 so the
    # interior store is sublane aligned, and >= Wp + 1 so every 3x3 tap read
    # stays inside the scratch.
    return ((Wp + 1 + 7) // 8) * 8


def _make_down_kernel(Hp, Wp, Cin, Cmid, Cout):
    HW = Hp * Wp
    P = _pad_rows(Wp)
    Cw = Cmid + Cin                      # fused conv2 + shortcut input channels
    f32, bf16 = jnp.float32, jnp.bfloat16

    def im2col_conv(pad_ref, col_ref, w_ref, ml, mr, C):
        # pad_ref : (HW + 2P, C) f32  -- rows [P, P+HW) hold the activation,
        #                                rows [0,P) / [P+HW, HW+2P) are zero.
        # col_ref : (HW, 9*C)   bf16 -- im2col buffer (tap-major along lanes).
        # w_ref   : (9*C, Co)   bf16 -- flattened 3x3 weights (tap-major rows).
        for k in range(9):
            dy, dx = divmod(k, 3)
            off = (dy - 1) * Wp + (dx - 1)
            tap = pad_ref[P + off:P + off + HW, :]
            if dx == 0:
                tap = tap * ml            # output col w needs w-1 >= 0
            elif dx == 2:
                tap = tap * mr            # output col w needs w+1 <  Wp
            col_ref[:, k * C:(k + 1) * C] = tap.astype(bf16)
        return jnp.dot(col_ref[...], w_ref[...], preferred_element_type=f32)

    def kernel(p_ref, s1_ref, b1_ref, ss_ref, bs_ref, w1_ref,
               s2_ref, b2_ref, wf_ref, bf_ref, o_ref,
               pad1, col1, pad2, col2):
        # Zero only the pad rows (interior rows are overwritten every step).
        pad1[0:P, :] = jnp.zeros((P, Cin), f32)
        pad1[P + HW:HW + 2 * P, :] = jnp.zeros((P, Cin), f32)
        pad2[0:P, :] = jnp.zeros((P, Cw), f32)
        pad2[P + HW:HW + 2 * P, :] = jnp.zeros((P, Cw), f32)

        # Column-validity masks for the horizontal taps, built in-kernel.
        row = lax.broadcasted_iota(jnp.int32, (HW, 1), 0)
        if (Wp & (Wp - 1)) == 0:
            w = row & (Wp - 1)            # w = row % Wp (power-of-two width)
        else:
            w = lax.rem(row, Wp)
        ml = (w >= 1).astype(f32)
        mr = (w <= Wp - 2).astype(f32)

        p = p_ref[...].astype(f32)                                   # (HW, Cin)

        # Eval-mode BatchNorm (+ ReLU on the double_conv branch).
        a1 = jnp.maximum(p * s1_ref[...] + b1_ref[...], 0.0)        # BN1 + ReLU
        a_s = p * ss_ref[...] + bs_ref[...]                         # BN_shortcut

        # conv1 as one (HW, 9*Cin) x (9*Cin, Cmid) matmul, then BN2 + ReLU
        # (conv1 bias folded into the BN2 shift).
        pad1[P:P + HW, :] = a1
        h = im2col_conv(pad1, col1, w1_ref, ml, mr, Cin)
        a2 = jnp.maximum(h * s2_ref[...] + b2_ref[...], 0.0)

        # conv2 + shortcut conv fused into one matmul over [a2 | a_s] channels,
        # plus the combined (conv2 + shortcut) bias; single output store.
        pad2[P:P + HW, 0:Cmid] = a2
        pad2[P:P + HW, Cmid:Cw] = a_s
        out = im2col_conv(pad2, col2, wf_ref, ml, mr, Cw) + bf_ref[...]
        o_ref[...] = out.astype(o_ref.dtype)

    return kernel


# ----------------------------- JAX glue helpers -----------------------------

def _fold_bn(gamma, beta, mean, var):
    scale = gamma / jnp.sqrt(var + EPS)
    shift = beta - mean * scale
    return (scale.reshape(1, -1).astype(jnp.float32),
            shift.reshape(1, -1).astype(jnp.float32))


def _spectral_normalize(w, n_iter=30):
    # torch.nn.utils.spectral_norm: divide the weight by the largest singular
    # value of the (out, in*kh*kw) matrix (estimated via power iteration).
    wm = w.reshape(w.shape[0], -1)
    u = jnp.ones((wm.shape[0],), jnp.float32)
    u = u / jnp.linalg.norm(u)
    v = wm.T @ u
    for _ in range(n_iter):
        v = wm.T @ u
        v = v / (jnp.linalg.norm(v) + 1e-12)
        u = wm @ v
        u = u / (jnp.linalg.norm(u) + 1e-12)
    sigma = u @ (wm @ v)
    return w / sigma


def _conv_w_to_taps(w):
    # (Co, Ci, 3, 3) -> (9, Ci, Co); tap index k = dy*3 + dx.
    co, ci, kh, kw = w.shape
    return jnp.transpose(w, (2, 3, 1, 0)).reshape(kh * kw, ci, co)


# ------------------------------- forward pass -------------------------------

def down_forward(x_nchw, params):
    N, Cin, H, W = x_nchw.shape
    Hp, Wp = H // 2, W // 2
    HW = Hp * Wp
    P = _pad_rows(Wp)

    # 2x2 max-pool + NCHW->NHWC layout in one XLA pass; the kernel input is
    # only the pooled bf16 activation (no stacked copy of x in HBM).
    x = jnp.transpose(x_nchw, (0, 2, 3, 1))
    pool = jnp.maximum(jnp.maximum(x[:, 0::2, 0::2, :], x[:, 0::2, 1::2, :]),
                       jnp.maximum(x[:, 1::2, 0::2, :], x[:, 1::2, 1::2, :]))
    pool = pool.reshape(N, HW, Cin).astype(jnp.bfloat16)

    # Fold BN running stats; fold conv biases (conv1 bias into the BN2 shift,
    # conv2 + shortcut biases into a single output bias).
    s1, b1 = _fold_bn(*params["bn1"])
    ss, bs = _fold_bn(*params["bns"])
    s2, b2 = _fold_bn(*params["bn2"])
    w1, c1 = params["conv1"]
    w2, c2 = params["conv2"]
    wS, cS = params["convs"]
    b2 = b2 + c1.reshape(1, -1).astype(jnp.float32) * s2             # BN2(conv1(x)+c1)
    bfin = (c2 + cS).reshape(1, -1).astype(jnp.float32)              # conv2 + shortcut bias

    w1t = _conv_w_to_taps(w1)                                        # (9, Cin,  Cmid)
    w2t = _conv_w_to_taps(w2)                                        # (9, Cmid, Cout)
    wSt = _conv_w_to_taps(wS)                                        # (9, Cin,  Cout)
    Cmid, Cout = w1t.shape[2], w2t.shape[2]
    Cw = Cmid + Cin

    # Flatten to tap-major (9*C, Co) matrices matching the im2col lane layout;
    # conv2 / shortcut weights are stacked along input channels (fused conv).
    w1f = w1t.reshape(9 * Cin, Cmid).astype(jnp.bfloat16)
    wff = jnp.concatenate([w2t, wSt], axis=1).reshape(9 * Cw, Cout).astype(jnp.bfloat16)

    kernel = _make_down_kernel(Hp, Wp, Cin, Cmid, Cout)

    def full(shape):
        return pl.BlockSpec(shape, lambda n, _s=shape: (0,) * len(_s))

    out = pl.pallas_call(
        kernel,
        out_shape=jax.ShapeDtypeStruct((N, HW, Cout), jnp.bfloat16),
        grid=(N,),
        in_specs=[
            pl.BlockSpec((None, HW, Cin), lambda n: (n, 0, 0)),      # pooled x
            full((1, Cin)), full((1, Cin)),                          # s1, b1
            full((1, Cin)), full((1, Cin)),                          # ss, bs
            full((9 * Cin, Cmid)),                                   # w1 (flat)
            full((1, Cmid)), full((1, Cmid)),                        # s2, b2'
            full((9 * Cw, Cout)),                                    # [w2 ; wS]
            full((1, Cout)),                                         # bias
        ],
        out_specs=pl.BlockSpec((None, HW, Cout), lambda n: (n, 0, 0)),
        scratch_shapes=[
            pltpu.VMEM((HW + 2 * P, Cin), jnp.float32),              # pad1
            pltpu.VMEM((HW, 9 * Cin), jnp.bfloat16),                 # col1 (im2col)
            pltpu.VMEM((HW + 2 * P, Cw), jnp.float32),               # pad2
            pltpu.VMEM((HW, 9 * Cw), jnp.bfloat16),                  # col2 (im2col)
        ],
        compiler_params=pltpu.CompilerParams(
            dimension_semantics=("parallel",)),
    )(pool, s1, b1, ss, bs, w1f, s2, b2, wff, bfin)

    # Back to NCHW f32 for parity with the PyTorch module (fuses with upcast).
    out = out.reshape(N, Hp, Wp, Cout).astype(jnp.float32)
    return jnp.transpose(out, (0, 3, 1, 2))


# ------------------------------ params / reference --------------------------

def init_params(key, in_ch, out_ch):
    mid = out_ch  # DoubleConv default: mid_channels = out_channels
    ks = jax.random.split(key, 6)

    def bn(k, c):
        k1, k2, k3, k4 = jax.random.split(k, 4)
        gamma = 1.0 + 0.1 * jax.random.normal(k1, (c,), jnp.float32)
        beta = 0.1 * jax.random.normal(k2, (c,), jnp.float32)
        mean = 0.1 * jax.random.normal(k3, (c,), jnp.float32)
        var = 0.5 + jax.random.uniform(k4, (c,), jnp.float32)
        return gamma, beta, mean, var

    def conv(k, ci, co):
        k1, k2 = jax.random.split(k)
        w = jax.random.normal(k1, (co, ci, 3, 3), jnp.float32) / np.sqrt(ci * 9.0)
        w = _spectral_normalize(w)
        b = 0.1 * jax.random.normal(k2, (co,), jnp.float32)
        return w, b

    return {
        "bn1": bn(ks[0], in_ch), "conv1": conv(ks[1], in_ch, mid),
        "bn2": bn(ks[2], mid),   "conv2": conv(ks[3], mid, out_ch),
        "bns": bn(ks[4], in_ch), "convs": conv(ks[5], in_ch, out_ch),
    }


def ref_forward(x, params):
    # Pure-JAX reference of Down.forward (eval-mode BN, spectral-normed weights).
    def bn(h, p):
        g, b, m, v = p
        inv = (1.0 / jnp.sqrt(v + EPS))[None, :, None, None]
        return (h - m[None, :, None, None]) * inv * g[None, :, None, None] + b[None, :, None, None]

    def conv(h, p):
        w, b = p
        y = lax.conv_general_dilated(h, w, (1, 1), "SAME",
                                     dimension_numbers=("NCHW", "OIHW", "NCHW"),
                                     precision=lax.Precision.HIGHEST)
        return y + b[None, :, None, None]

    p = lax.reduce_window(x, -jnp.inf, lax.max, (1, 1, 2, 2), (1, 1, 2, 2), "VALID")
    sc = conv(bn(p, params["bns"]), params["convs"])
    h = conv(jax.nn.relu(bn(p, params["bn1"])), params["conv1"])
    h = conv(jax.nn.relu(bn(h, params["bn2"])), params["conv2"])
    return h + sc


# ----------------------------------- main -----------------------------------

if __name__ == "__main__":
    key = jax.random.PRNGKey(0)
    kx, kp = jax.random.split(key)
    N, Cin, Cout, H, W = 2, 4, 8, 16, 16

    x = jax.random.normal(kx, (N, Cin, H, W), jnp.float32)
    params = init_params(kp, Cin, Cout)

    out = jax.block_until_ready(down_forward(x, params))
    assert out.shape == (N, Cout, H // 2, W // 2), out.shape

    ref = jax.block_until_ready(ref_forward(x, params))
    np.testing.assert_allclose(np.asarray(out), np.asarray(ref), rtol=2e-2, atol=2e-2)

    print("KERNEL_OK")
</pallas_src>

<mosaic_0001>
module attributes {stable_mosaic.version = 11 : i64} {
  func.func @kernel(%arg0: i32, %arg1: memref<1x64x4xbf16, #tpu.memory_space<vmem>>, %arg2: memref<1x4xf32, #tpu.memory_space<vmem>>, %arg3: memref<1x4xf32, #tpu.memory_space<vmem>>, %arg4: memref<1x4xf32, #tpu.memory_space<vmem>>, %arg5: memref<1x4xf32, #tpu.memory_space<vmem>>, %arg6: memref<36x8xbf16, #tpu.memory_space<vmem>>, %arg7: memref<1x8xf32, #tpu.memory_space<vmem>>, %arg8: memref<1x8xf32, #tpu.memory_space<vmem>>, %arg9: memref<108x8xbf16, #tpu.memory_space<vmem>>, %arg10: memref<1x8xf32, #tpu.memory_space<vmem>>, %arg11: memref<1x64x8xbf16, #tpu.memory_space<vmem>>, %arg12: memref<96x4xf32, #tpu.memory_space<vmem>>, %arg13: memref<64x36xbf16, #tpu.memory_space<vmem>>, %arg14: memref<96x12xf32, #tpu.memory_space<vmem>>, %arg15: memref<64x108xbf16, #tpu.memory_space<vmem>>) attributes {dimension_semantics = [#tpu.dimension_semantics<parallel>], iteration_bounds = array<i64: 2>, scalar_prefetch = 0 : i64, scratch_operands = 4 : i64, tpu.core_type = #tpu.core_type<tc>, window_params = [{transform_indices = @transform_0, window_bounds = array<i64: 1, 64, 4>}, {pipeline_mode = #tpu.pipeline_mode<synchronous>, transform_indices = @transform_1, window_bounds = array<i64: 1, 4>}, {pipeline_mode = #tpu.pipeline_mode<synchronous>, transform_indices = @transform_2, window_bounds = array<i64: 1, 4>}, {pipeline_mode = #tpu.pipeline_mode<synchronous>, transform_indices = @transform_3, window_bounds = array<i64: 1, 4>}, {pipeline_mode = #tpu.pipeline_mode<synchronous>, transform_indices = @transform_4, window_bounds = array<i64: 1, 4>}, {pipeline_mode = #tpu.pipeline_mode<synchronous>, transform_indices = @transform_5, window_bounds = array<i64: 36, 8>}, {pipeline_mode = #tpu.pipeline_mode<synchronous>, transform_indices = @transform_6, window_bounds = array<i64: 1, 8>}, {pipeline_mode = #tpu.pipeline_mode<synchronous>, transform_indices = @transform_7, window_bounds = array<i64: 1, 8>}, {pipeline_mode = #tpu.pipeline_mode<synchronous>, transform_indices = @transform_8, window_bounds = array<i64: 108, 8>}, {pipeline_mode = #tpu.pipeline_mode<synchronous>, transform_indices = @transform_9, window_bounds = array<i64: 1, 8>}, {transform_indices = @transform_10, window_bounds = array<i64: 1, 64, 8>}]} {
    %cst = arith.constant 0.000000e+00 : f32
    %0 = vector.broadcast %cst : f32 to vector<16x4xf32>
    %c0 = arith.constant 0 : index
    %c0_0 = arith.constant 0 : index
    %1 = vector.load %arg12[%c0, %c0_0] : memref<96x4xf32, #tpu.memory_space<vmem>>, vector<16x4xf32>
    tpu.vector_store %arg12[%c0, %c0_0], %0 {strides = array<i32>} : memref<96x4xf32, #tpu.memory_space<vmem>>, vector<16x4xf32>,
    %cst_1 = arith.constant 0.000000e+00 : f32
    %2 = vector.broadcast %cst_1 : f32 to vector<16x4xf32>
    %c80 = arith.constant 80 : index
    %c0_2 = arith.constant 0 : index
    %3 = vector.load %arg12[%c80, %c0_2] : memref<96x4xf32, #tpu.memory_space<vmem>>, vector<16x4xf32>
    tpu.vector_store %arg12[%c80, %c0_2], %2 {strides = array<i32>} : memref<96x4xf32, #tpu.memory_space<vmem>>, vector<16x4xf32>,
    %cst_3 = arith.constant 0.000000e+00 : f32
    %4 = vector.broadcast %cst_3 : f32 to vector<16x12xf32>
    %c0_4 = arith.constant 0 : index
    %c0_5 = arith.constant 0 : index
    %5 = vector.load %arg14[%c0_4, %c0_5] : memref<96x12xf32, #tpu.memory_space<vmem>>, vector<16x12xf32>
    tpu.vector_store %arg14[%c0_4, %c0_5], %4 {strides = array<i32>} : memref<96x12xf32, #tpu.memory_space<vmem>>, vector<16x12xf32>,
    %cst_6 = arith.constant 0.000000e+00 : f32
    %6 = vector.broadcast %cst_6 : f32 to vector<16x12xf32>
    %c80_7 = arith.constant 80 : index
    %c0_8 = arith.constant 0 : index
    %7 = vector.load %arg14[%c80_7, %c0_8] : memref<96x12xf32, #tpu.memory_space<vmem>>, vector<16x12xf32>
    tpu.vector_store %arg14[%c80_7, %c0_8], %6 {strides = array<i32>} : memref<96x12xf32, #tpu.memory_space<vmem>>, vector<16x12xf32>,
    %8 = tpu.iota {dimensions = array<i32: 0>} : vector<64x1xi32>
    %c7_i32 = arith.constant 7 : i32
    %9 = vector.broadcast %c7_i32 : i32 to vector<64x1xi32>
    %10 = arith.andi %8, %9 : vector<64x1xi32>
    %c1_i32 = arith.constant 1 : i32
    %11 = vector.broadcast %c1_i32 : i32 to vector<64x1xi32>
    %12 = arith.cmpi sge, %10, %11 : vector<64x1xi32>
    %13 = arith.extui %12 : vector<64x1xi1> to vector<64x1xi32>
    %14 = arith.sitofp %13 : vector<64x1xi32> to vector<64x1xf32>
    %c6_i32 = arith.constant 6 : i32
    %15 = vector.broadcast %c6_i32 : i32 to vector<64x1xi32>
    %16 = arith.cmpi sle, %10, %15 : vector<64x1xi32>
    %17 = arith.extui %16 : vector<64x1xi1> to vector<64x1xi32>
    %18 = arith.sitofp %17 : vector<64x1xi32> to vector<64x1xf32>
    %c0_9 = arith.constant 0 : index
    %c0_10 = arith.constant 0 : index
    %c0_11 = arith.constant 0 : index
    %19 = vector.load %arg1[%c0_9, %c0_10, %c0_11] : memref<1x64x4xbf16, #tpu.memory_space<vmem>>, vector<1x64x4xbf16>
    %20 = vector.shape_cast %19 : vector<1x64x4xbf16> to vector<64x4xbf16>
    %21 = arith.extf %20 : vector<64x4xbf16> to vector<64x4xf32>
    %c0_12 = arith.constant 0 : index
    %c0_13 = arith.constant 0 : index
    %22 = vector.load %arg2[%c0_12, %c0_13] : memref<1x4xf32, #tpu.memory_space<vmem>>, vector<1x4xf32>
    %23 = vector.broadcast %22 : vector<1x4xf32> to vector<64x4xf32>
    %24 = arith.mulf %21, %23 : vector<64x4xf32>
    %c0_14 = arith.constant 0 : index
    %c0_15 = arith.constant 0 : index
    %25 = vector.load %arg3[%c0_14, %c0_15] : memref<1x4xf32, #tpu.memory_space<vmem>>, vector<1x4xf32>
    %26 = vector.broadcast %25 : vector<1x4xf32> to vector<64x4xf32>
    %27 = arith.addf %24, %26 : vector<64x4xf32>
    %cst_16 = arith.constant 0.000000e+00 : f32
    %28 = vector.broadcast %cst_16 : f32 to vector<64x4xf32>
    %29 = arith.maximumf %27, %28 : vector<64x4xf32>
    %c0_17 = arith.constant 0 : index
    %c0_18 = arith.constant 0 : index
    %30 = vector.load %arg4[%c0_17, %c0_18] : memref<1x4xf32, #tpu.memory_space<vmem>>, vector<1x4xf32>
    %31 = vector.broadcast %30 : vector<1x4xf32> to vector<64x4xf32>
    %32 = arith.mulf %21, %31 : vector<64x4xf32>
    %c0_19 = arith.constant 0 : index
    %c0_20 = arith.constant 0 : index
    %33 = vector.load %arg5[%c0_19, %c0_20] : memref<1x4xf32, #tpu.memory_space<vmem>>, vector<1x4xf32>
    %34 = vector.broadcast %33 : vector<1x4xf32> to vector<64x4xf32>
    %35 = arith.addf %32, %34 : vector<64x4xf32>
    %c16 = arith.constant 16 : index
    %c0_21 = arith.constant 0 : index
    %36 = vector.load %arg12[%c16, %c0_21] : memref<96x4xf32, #tpu.memory_space<vmem>>, vector<64x4xf32>
    tpu.vector_store %arg12[%c16, %c0_21], %29 {strides = array<i32>} : memref<96x4xf32, #tpu.memory_space<vmem>>, vector<64x4xf32>,
    %c7 = arith.constant 7 : index
    %c0_22 = arith.constant 0 : index
    %37 = vector.load %arg12[%c7, %c0_22] : memref<96x4xf32, #tpu.memory_space<vmem>>, vector<64x4xf32>
    %38 = vector.broadcast %14 : vector<64x1xf32> to vector<64x4xf32>
    %39 = arith.mulf %37, %38 : vector<64x4xf32>
    %40 = arith.truncf %39 : vector<64x4xf32> to vector<64x4xbf16>
    %c0_23 = arith.constant 0 : index
    %c0_24 = arith.constant 0 : index
    %41 = vector.load %arg13[%c0_23, %c0_24] : memref<64x36xbf16, #tpu.memory_space<vmem>>, vector<64x4xbf16>
    tpu.vector_store %arg13[%c0_23, %c0_24], %40 {strides = array<i32>} : memref<64x36xbf16, #tpu.memory_space<vmem>>, vector<64x4xbf16>,
    %c8 = arith.constant 8 : index
    %c0_25 = arith.constant 0 : index
    %42 = vector.load %arg12[%c8, %c0_25] : memref<96x4xf32, #tpu.memory_space<vmem>>, vector<64x4xf32>
    %43 = arith.truncf %42 : vector<64x4xf32> to vector<64x4xbf16>
    %c0_26 = arith.constant 0 : index
    %c4 = arith.constant 4 : index
    %44 = vector.load %arg13[%c0_26, %c4] : memref<64x36xbf16, #tpu.memory_space<vmem>>, vector<64x4xbf16>
    tpu.vector_store %arg13[%c0_26, %c4], %43 {strides = array<i32>} : memref<64x36xbf16, #tpu.memory_space<vmem>>, vector<64x4xbf16>,
    %c9 = arith.constant 9 : index
    %c0_27 = arith.constant 0 : index
    %45 = vector.load %arg12[%c9, %c0_27] : memref<96x4xf32, #tpu.memory_space<vmem>>, vector<64x4xf32>
    %46 = vector.broadcast %18 : vector<64x1xf32> to vector<64x4xf32>
    %47 = arith.mulf %45, %46 : vector<64x4xf32>
    %48 = arith.truncf %47 : vector<64x4xf32> to vector<64x4xbf16>
    %c0_28 = arith.constant 0 : index
    %c8_29 = arith.constant 8 : index
    %49 = vector.load %arg13[%c0_28, %c8_29] : memref<64x36xbf16, #tpu.memory_space<vmem>>, vector<64x4xbf16>
    tpu.vector_store %arg13[%c0_28, %c8_29], %48 {strides = array<i32>} : memref<64x36xbf16, #tpu.memory_space<vmem>>, vector<64x4xbf16>,
    %c15 = arith.constant 15 : index
    %c0_30 = arith.constant 0 : index
    %50 = vector.load %arg12[%c15, %c0_30] : memref<96x4xf32, #tpu.memory_space<vmem>>, vector<64x4xf32>
    %51 = vector.broadcast %14 : vector<64x1xf32> to vector<64x4xf32>
    %52 = arith.mulf %50, %51 : vector<64x4xf32>
    %53 = arith.truncf %52 : vector<64x4xf32> to vector<64x4xbf16>
    %c0_31 = arith.constant 0 : index
    %c12 = arith.constant 12 : index
    %54 = vector.load %arg13[%c0_31, %c12] : memref<64x36xbf16, #tpu.memory_space<vmem>>, vector<64x4xbf16>
    tpu.vector_store %arg13[%c0_31, %c12], %53 {strides = array<i32>} : memref<64x36xbf16, #tpu.memory_space<vmem>>, vector<64x4xbf16>,
    %c16_32 = arith.constant 16 : index
    %c0_33 = arith.constant 0 : index
    %55 = vector.load %arg12[%c16_32, %c0_33] : memref<96x4xf32, #tpu.memory_space<vmem>>, vector<64x4xf32>
    %56 = arith.truncf %55 : vector<64x4xf32> to vector<64x4xbf16>
    %c0_34 = arith.constant 0 : index
    %c16_35 = arith.constant 16 : index
    %57 = vector.load %arg13[%c0_34, %c16_35] : memref<64x36xbf16, #tpu.memory_space<vmem>>, vector<64x4xbf16>
    tpu.vector_store %arg13[%c0_34, %c16_35], %56 {strides = array<i32>} : memref<64x36xbf16, #tpu.memory_space<vmem>>, vector<64x4xbf16>,
    %c17 = arith.constant 17 : index
    %c0_36 = arith.constant 0 : index
    %58 = vector.load %arg12[%c17, %c0_36] : memref<96x4xf32, #tpu.memory_space<vmem>>, vector<64x4xf32>
    %59 = vector.broadcast %18 : vector<64x1xf32> to vector<64x4xf32>
    %60 = arith.mulf %58, %59 : vector<64x4xf32>
    %61 = arith.truncf %60 : vector<64x4xf32> to vector<64x4xbf16>
    %c0_37 = arith.constant 0 : index
    %c20 = arith.constant 20 : index
    %62 = vector.load %arg13[%c0_37, %c20] : memref<64x36xbf16, #tpu.memory_space<vmem>>, vector<64x4xbf16>
    tpu.vector_store %arg13[%c0_37, %c20], %61 {strides = array<i32>} : memref<64x36xbf16, #tpu.memory_space<vmem>>, vector<64x4xbf16>,
    %c23 = arith.constant 23 : index
    %c0_38 = arith.constant 0 : index
    %63 = vector.load %arg12[%c23, %c0_38] : memref<96x4xf32, #tpu.memory_space<vmem>>, vector<64x4xf32>
    %64 = vector.broadcast %14 : vector<64x1xf32> to vector<64x4xf32>
    %65 = arith.mulf %63, %64 : vector<64x4xf32>
    %66 = arith.truncf %65 : vector<64x4xf32> to vector<64x4xbf16>
    %c0_39 = arith.constant 0 : index
    %c24 = arith.constant 24 : index
    %67 = vector.load %arg13[%c0_39, %c24] : memref<64x36xbf16, #tpu.memory_space<vmem>>, vector<64x4xbf16>
    tpu.vector_store %arg13[%c0_39, %c24], %66 {strides = array<i32>} : memref<64x36xbf16, #tpu.memory_space<vmem>>, vector<64x4xbf16>,
    %c24_40 = arith.constant 24 : index
    %c0_41 = arith.constant 0 : index
    %68 = vector.load %arg12[%c24_40, %c0_41] : memref<96x4xf32, #tpu.memory_space<vmem>>, vector<64x4xf32>
    %69 = arith.truncf %68 : vector<64x4xf32> to vector<64x4xbf16>
    %c0_42 = arith.constant 0 : index
    %c28 = arith.constant 28 : index
    %70 = vector.load %arg13[%c0_42, %c28] : memref<64x36xbf16, #tpu.memory_space<vmem>>, vector<64x4xbf16>
    tpu.vector_store %arg13[%c0_42, %c28], %69 {strides = array<i32>} : memref<64x36xbf16, #tpu.memory_space<vmem>>, vector<64x4xbf16>,
    %c25 = arith.constant 25 : index
    %c0_43 = arith.constant 0 : index
    %71 = vector.load %arg12[%c25, %c0_43] : memref<96x4xf32, #tpu.memory_space<vmem>>, vector<64x4xf32>
    %72 = vector.broadcast %18 : vector<64x1xf32> to vector<64x4xf32>
    %73 = arith.mulf %71, %72 : vector<64x4xf32>
    %74 = arith.truncf %73 : vector<64x4xf32> to vector<64x4xbf16>
    %c0_44 = arith.constant 0 : index
    %c32 = arith.constant 32 : index
    %75 = vector.load %arg13[%c0_44, %c32] : memref<64x36xbf16, #tpu.memory_space<vmem>>, vector<64x4xbf16>
    tpu.vector_store %arg13[%c0_44, %c32], %74 {strides = array<i32>} : memref<64x36xbf16, #tpu.memory_space<vmem>>, vector<64x4xbf16>,
    %c0_45 = arith.constant 0 : index
    %c0_46 = arith.constant 0 : index
    %76 = vector.load %arg13[%c0_45, %c0_46] : memref<64x36xbf16, #tpu.memory_space<vmem>>, vector<64x36xbf16>
    %c0_47 = arith.constant 0 : index
    %c0_48 = arith.constant 0 : index
    %77 = vector.load %arg6[%c0_47, %c0_48] : memref<36x8xbf16, #tpu.memory_space<vmem>>, vector<36x8xbf16>
    %cst_49 = arith.constant dense<0.000000e+00> : vector<64x8xf32>
    %78 = tpu.matmul %76, %77, %cst_49 {dimension_numbers = #tpu.dot_dimension_numbers<[1], [0], [0], [1], [0, 0, 1, 1], [], []>} : vector<64x36xbf16>, vector<36x8xbf16>, vector<64x8xf32> -> vector<64x8xf32>
    %c0_50 = arith.constant 0 : index
    %c0_51 = arith.constant 0 : index
    %79 = vector.load %arg7[%c0_50, %c0_51] : memref<1x8xf32, #tpu.memory_space<vmem>>, vector<1x8xf32>
    %80 = vector.broadcast %79 : vector<1x8xf32> to vector<64x8xf32>
    %81 = arith.mulf %78, %80 : vector<64x8xf32>
    %c0_52 = arith.constant 0 : index
    %c0_53 = arith.constant 0 : index
    %82 = vector.load %arg8[%c0_52, %c0_53] : memref<1x8xf32, #tpu.memory_space<vmem>>, vector<1x8xf32>
    %83 = vector.broadcast %82 : vector<1x8xf32> to vector<64x8xf32>
    %84 = arith.addf %81, %83 : vector<64x8xf32>
    %cst_54 = arith.constant 0.000000e+00 : f32
    %85 = vector.broadcast %cst_54 : f32 to vector<64x8xf32>
    %86 = arith.maximumf %84, %85 : vector<64x8xf32>
    %c16_55 = arith.constant 16 : index
    %c0_56 = arith.constant 0 : index
    %87 = vector.load %arg14[%c16_55, %c0_56] : memref<96x12xf32, #tpu.memory_space<vmem>>, vector<64x8xf32>
    tpu.vector_store %arg14[%c16_55, %c0_56], %86 {strides = array<i32>} : memref<96x12xf32, #tpu.memory_space<vmem>>, vector<64x8xf32>,
    %c16_57 = arith.constant 16 : index
    %c8_58 = arith.constant 8 : index
    %88 = vector.load %arg14[%c16_57, %c8_58] : memref<96x12xf32, #tpu.memory_space<vmem>>, vector<64x4xf32>
    tpu.vector_store %arg14[%c16_57, %c8_58], %35 {strides = array<i32>} : memref<96x12xf32, #tpu.memory_space<vmem>>, vector<64x4xf32>,
    %c7_59 = arith.constant 7 : index
    %c0_60 = arith.constant 0 : index
    %89 = vector.load %arg14[%c7_59, %c0_60] : memref<96x12xf32, #tpu.memory_space<vmem>>, vector<64x12xf32>
    %90 = vector.broadcast %14 : vector<64x1xf32> to vector<64x12xf32>
    %91 = arith.mulf %89, %90 : vector<64x12xf32>
    %92 = arith.truncf %91 : vector<64x12xf32> to vector<64x12xbf16>
    %c0_61 = arith.constant 0 : index
    %c0_62 = arith.constant 0 : index
    %93 = vector.load %arg15[%c0_61, %c0_62] : memref<64x108xbf16, #tpu.memory_space<vmem>>, vector<64x12xbf16>
    tpu.vector_store %arg15[%c0_61, %c0_62], %92 {strides = array<i32>} : memref<64x108xbf16, #tpu.memory_space<vmem>>, vector<64x12xbf16>,
    %c8_63 = arith.constant 8 : index
    %c0_64 = arith.constant 0 : index
    %94 = vector.load %arg14[%c8_63, %c0_64] : memref<96x12xf32, #tpu.memory_space<vmem>>, vector<64x12xf32>
    %95 = arith.truncf %94 : vector<64x12xf32> to vector<64x12xbf16>
    %c0_65 = arith.constant 0 : index
    %c12_66 = arith.constant 12 : index
    %96 = vector.load %arg15[%c0_65, %c12_66] : memref<64x108xbf16, #tpu.memory_space<vmem>>, vector<64x12xbf16>
    tpu.vector_store %arg15[%c0_65, %c12_66], %95 {strides = array<i32>} : memref<64x108xbf16, #tpu.memory_space<vmem>>, vector<64x12xbf16>,
    %c9_67 = arith.constant 9 : index
    %c0_68 = arith.constant 0 : index
    %97 = vector.load %arg14[%c9_67, %c0_68] : memref<96x12xf32, #tpu.memory_space<vmem>>, vector<64x12xf32>
    %98 = vector.broadcast %18 : vector<64x1xf32> to vector<64x12xf32>
    %99 = arith.mulf %97, %98 : vector<64x12xf32>
    %100 = arith.truncf %99 : vector<64x12xf32> to vector<64x12xbf16>
    %c0_69 = arith.constant 0 : index
    %c24_70 = arith.constant 24 : index
    %101 = vector.load %arg15[%c0_69, %c24_70] : memref<64x108xbf16, #tpu.memory_space<vmem>>, vector<64x12xbf16>
    tpu.vector_store %arg15[%c0_69, %c24_70], %100 {strides = array<i32>} : memref<64x108xbf16, #tpu.memory_space<vmem>>, vector<64x12xbf16>,
    %c15_71 = arith.constant 15 : index
    %c0_72 = arith.constant 0 : index
    %102 = vector.load %arg14[%c15_71, %c0_72] : memref<96x12xf32, #tpu.memory_space<vmem>>, vector<64x12xf32>
    %103 = vector.broadcast %14 : vector<64x1xf32> to vector<64x12xf32>
    %104 = arith.mulf %102, %103 : vector<64x12xf32>
    %105 = arith.truncf %104 : vector<64x12xf32> to vector<64x12xbf16>
    %c0_73 = arith.constant 0 : index
    %c36 = arith.constant 36 : index
    %106 = vector.load %arg15[%c0_73, %c36] : memref<64x108xbf16, #tpu.memory_space<vmem>>, vector<64x12xbf16>
    tpu.vector_store %arg15[%c0_73, %c36], %105 {strides = array<i32>} : memref<64x108xbf16, #tpu.memory_space<vmem>>, vector<64x12xbf16>,
    %c16_74 = arith.constant 16 : index
    %c0_75 = arith.constant 0 : index
    %107 = vector.load %arg14[%c16_74, %c0_75] : memref<96x12xf32, #tpu.memory_space<vmem>>, vector<64x12xf32>
    %108 = arith.truncf %107 : vector<64x12xf32> to vector<64x12xbf16>
    %c0_76 = arith.constant 0 : index
    %c48 = arith.constant 48 : index
    %109 = vector.load %arg15[%c0_76, %c48] : memref<64x108xbf16, #tpu.memory_space<vmem>>, vector<64x12xbf16>
    tpu.vector_store %arg15[%c0_76, %c48], %108 {strides = array<i32>} : memref<64x108xbf16, #tpu.memory_space<vmem>>, vector<64x12xbf16>,
    %c17_77 = arith.constant 17 : index
    %c0_78 = arith.constant 0 : index
    %110 = vector.load %arg14[%c17_77, %c0_78] : memref<96x12xf32, #tpu.memory_space<vmem>>, vector<64x12xf32>
    %111 = vector.broadcast %18 : vector<64x1xf32> to vector<64x12xf32>
    %112 = arith.mulf %110, %111 : vector<64x12xf32>
    %113 = arith.truncf %112 : vector<64x12xf32> to vector<64x12xbf16>
    %c0_79 = arith.constant 0 : index
    %c60 = arith.constant 60 : index
    %114 = vector.load %arg15[%c0_79, %c60] : memref<64x108xbf16, #tpu.memory_space<vmem>>, vector<64x12xbf16>
    tpu.vector_store %arg15[%c0_79, %c60], %113 {strides = array<i32>} : memref<64x108xbf16, #tpu.memory_space<vmem>>, vector<64x12xbf16>,
    %c23_80 = arith.constant 23 : index
    %c0_81 = arith.constant 0 : index
    %115 = vector.load %arg14[%c23_80, %c0_81] : memref<96x12xf32, #tpu.memory_space<vmem>>, vector<64x12xf32>
    %116 = vector.broadcast %14 : vector<64x1xf32> to vector<64x12xf32>
    %117 = arith.mulf %115, %116 : vector<64x12xf32>
    %118 = arith.truncf %117 : vector<64x12xf32> to vector<64x12xbf16>
    %c0_82 = arith.constant 0 : index
    %c72 = arith.constant 72 : index
    %119 = vector.load %arg15[%c0_82, %c72] : memref<64x108xbf16, #tpu.memory_space<vmem>>, vector<64x12xbf16>
    tpu.vector_store %arg15[%c0_82, %c72], %118 {strides = array<i32>} : memref<64x108xbf16, #tpu.memory_space<vmem>>, vector<64x12xbf16>,
    %c24_83 = arith.constant 24 : index
    %c0_84 = arith.constant 0 : index
    %120 = vector.load %arg14[%c24_83, %c0_84] : memref<96x12xf32, #tpu.memory_space<vmem>>, vector<64x12xf32>
    %121 = arith.truncf %120 : vector<64x12xf32> to vector<64x12xbf16>
    %c0_85 = arith.constant 0 : index
    %c84 = arith.constant 84 : index
    %122 = vector.load %arg15[%c0_85, %c84] : memref<64x108xbf16, #tpu.memory_space<vmem>>, vector<64x12xbf16>
    tpu.vector_store %arg15[%c0_85, %c84], %121 {strides = array<i32>} : memref<64x108xbf16, #tpu.memory_space<vmem>>, vector<64x12xbf16>,
    %c25_86 = arith.constant 25 : index
    %c0_87 = arith.constant 0 : index
    %123 = vector.load %arg14[%c25_86, %c0_87] : memref<96x12xf32, #tpu.memory_space<vmem>>, vector<64x12xf32>
    %124 = vector.broadcast %18 : vector<64x1xf32> to vector<64x12xf32>
    %125 = arith.mulf %123, %124 : vector<64x12xf32>
    %126 = arith.truncf %125 : vector<64x12xf32> to vector<64x12xbf16>
    %c0_88 = arith.constant 0 : index
    %c96 = arith.constant 96 : index
    %127 = vector.load %arg15[%c0_88, %c96] : memref<64x108xbf16, #tpu.memory_space<vmem>>, vector<64x12xbf16>
    tpu.vector_store %arg15[%c0_88, %c96], %126 {strides = array<i32>} : memref<64x108xbf16, #tpu.memory_space<vmem>>, vector<64x12xbf16>,
    %c0_89 = arith.constant 0 : index
    %c0_90 = arith.constant 0 : index
    %128 = vector.load %arg15[%c0_89, %c0_90] : memref<64x108xbf16, #tpu.memory_space<vmem>>, vector<64x108xbf16>
    %c0_91 = arith.constant 0 : index
    %c0_92 = arith.constant 0 : index
    %129 = vector.load %arg9[%c0_91, %c0_92] : memref<108x8xbf16, #tpu.memory_space<vmem>>, vector<108x8xbf16>
    %cst_93 = arith.constant dense<0.000000e+00> : vector<64x8xf32>
    %130 = tpu.matmul %128, %129, %cst_93 {dimension_numbers = #tpu.dot_dimension_numbers<[1], [0], [0], [1], [0, 0, 1, 1], [], []>} : vector<64x108xbf16>, vector<108x8xbf16>, vector<64x8xf32> -> vector<64x8xf32>
    %c0_94 = arith.constant 0 : index
    %c0_95 = arith.constant 0 : index
    %131 = vector.load %arg10[%c0_94, %c0_95] : memref<1x8xf32, #tpu.memory_space<vmem>>, vector<1x8xf32>
    %132 = vector.broadcast %131 : vector<1x8xf32> to vector<64x8xf32>
    %133 = arith.addf %130, %132 : vector<64x8xf32>
    %134 = arith.truncf %133 : vector<64x8xf32> to vector<64x8xbf16>
    %c0_96 = arith.constant 0 : index
    %c0_97 = arith.constant 0 : index
    %c0_98 = arith.constant 0 : index
    %135 = vector.load %arg11[%c0_96, %c0_97, %c0_98] : memref<1x64x8xbf16, #tpu.memory_space<vmem>>, vector<1x64x8xbf16>
    %136 = vector.shape_cast %135 : vector<1x64x8xbf16> to vector<64x8xbf16>
    %137 = vector.shape_cast %134 : vector<64x8xbf16> to vector<1x64x8xbf16>
    tpu.vector_store %arg11[%c0_96, %c0_97, %c0_98], %137 {strides = array<i32>} : memref<1x64x8xbf16, #tpu.memory_space<vmem>>, vector<1x64x8xbf16>,
    return
  }
  func.func @transform_0(%arg0: i32) -> (i32, i32, i32) {
    %c0_i32 = arith.constant 0 : i32
    %c0_i32_0 = arith.constant 0 : i32
    %c0_i32_1 = arith.constant 0 : i32
    return %arg0, %c0_i32, %c0_i32_0 : i32, i32, i32
  }
  func.func @transform_1(%arg0: i32) -> (i32, i32) {
    %c0_i32 = arith.constant 0 : i32
    %c0_i32_0 = arith.constant 0 : i32
    %c0_i32_1 = arith.constant 0 : i32
    return %c0_i32, %c0_i32_0 : i32, i32
  }
  func.func @transform_2(%arg0: i32) -> (i32, i32) {
    %c0_i32 = arith.constant 0 : i32
    %c0_i32_0 = arith.constant 0 : i32
    %c0_i32_1 = arith.constant 0 : i32
    return %c0_i32, %c0_i32_0 : i32, i32
  }
  func.func @transform_3(%arg0: i32) -> (i32, i32) {
    %c0_i32 = arith.constant 0 : i32
    %c0_i32_0 = arith.constant 0 : i32
    %c0_i32_1 = arith.constant 0 : i32
    return %c0_i32, %c0_i32_0 : i32, i32
  }
  func.func @transform_4(%arg0: i32) -> (i32, i32) {
    %c0_i32 = arith.constant 0 : i32
    %c0_i32_0 = arith.constant 0 : i32
    %c0_i32_1 = arith.constant 0 : i32
    return %c0_i32, %c0_i32_0 : i32, i32
  }
  func.func @transform_5(%arg0: i32) -> (i32, i32) {
    %c0_i32 = arith.constant 0 : i32
    %c0_i32_0 = arith.constant 0 : i32
    %c0_i32_1 = arith.constant 0 : i32
    return %c0_i32, %c0_i32_0 : i32, i32
  }
  func.func @transform_6(%arg0: i32) -> (i32, i32) {
    %c0_i32 = arith.constant 0 : i32
    %c0_i32_0 = arith.constant 0 : i32
    %c0_i32_1 = arith.constant 0 : i32
    return %c0_i32, %c0_i32_0 : i32, i32
  }
  func.func @transform_7(%arg0: i32) -> (i32, i32) {
    %c0_i32 = arith.constant 0 : i32
    %c0_i32_0 = arith.constant 0 : i32
    %c0_i32_1 = arith.constant 0 : i32
    return %c0_i32, %c0_i32_0 : i32, i32
  }
  func.func @transform_8(%arg0: i32) -> (i32, i32) {
    %c0_i32 = arith.constant 0 : i32
    %c0_i32_0 = arith.constant 0 : i32
    %c0_i32_1 = arith.constant 0 : i32
    return %c0_i32, %c0_i32_0 : i32, i32
  }
  func.func @transform_9(%arg0: i32) -> (i32, i32) {
    %c0_i32 = arith.constant 0 : i32
    %c0_i32_0 = arith.constant 0 : i32
    %c0_i32_1 = arith.constant 0 : i32
    return %c0_i32, %c0_i32_0 : i32, i32
  }
  func.func @transform_10(%arg0: i32) -> (i32, i32, i32) {
    %c0_i32 = arith.constant 0 : i32
    %c0_i32_0 = arith.constant 0 : i32
    %c0_i32_1 = arith.constant 0 : i32
    return %arg0, %c0_i32, %c0_i32_0 : i32, i32, i32
  }
}

</mosaic_0001>

<bundles_post_ra>
// kernel: tpu_custom_call.1
= control target key start
LH: loop header
LB: loop body
LE: loop exit
PB: predicated region body
PF: predicated region fallthrough
CT: control target
= control target key end

     0   :  { %s2808_s13 = smov 0   ;;  %s3562_s0 = inlined_call_operand.vmem [shape: bf16[2,64,4], index: 0, kind: input, shape index: {}]   ;;  %s3563_s1 = inlined_call_operand.vmem [shape: f32[1,4], index: 1, kind: input, shape index: {}]   ;;  %s3564_s2 = inlined_call_operand.vmem [shape: f32[1,4], index: 2, kind: input, shape index: {}]   ;;  %s3565_s3 = inlined_call_operand.vmem [shape: f32[1,4], index: 3, kind: input, shape index: {}]   ;;  %s3566_s4 = inlined_call_operand.vmem [shape: f32[1,4], index: 4, kind: input, shape index: {}]   ;;  %s3567_s5 = inlined_call_operand.vmem [shape: bf16[36,8], index: 5, kind: input, shape index: {}]   ;;  %s3568_s6 = inlined_call_operand.vmem [shape: f32[1,8], index: 6, kind: input, shape index: {}]   ;;  %s3569_s7 = inlined_call_operand.vmem [shape: f32[1,8], index: 7, kind: input, shape index: {}]   ;;  %s3570_s8 = inlined_call_operand.vmem [shape: bf16[108,8], index: 8, kind: input, shape index: {}]   ;;  %s3571_s9 = inlined_call_operand.vmem [shape: f32[1,8], index: 9, kind: input, shape index: {}]   ;;  %s3572_s10 = inlined_call_operand.vmem [shape: bf16[2,64,8], index: 10, kind: output, shape index: {}]  }
   0x1 LB: > { %s2248_s14 = sadd.s32 4294967295, %s2736_s13   ;;  %p2252_p0 = scmp.ge.s32.totalorder %s2736_s13, 1  ;;  %s2736_s13 = sphi %s2808_s13, %s20_s13  }
   0x2   : > { %p312_p1 = scmp.lt.s32.totalorder %s2736_s13, 3 }
   0x4   : > { %p313_p2 = pnand %p2252_p0, %p312_p1 }
   0x5   : > { %p350_p3 = scmp.lt.s32.totalorder (!%p313_p2), %s2248_s14, 1  ;;  %s2739_s23 = smov (!%p313_p2), 4  }
   0x6   : > { %316 = sbr.rel (%p313_p2) target bundleno = 889 (0x379), region = 60  ;;  %s2740_s24 = smov (!%p313_p2), 16  }
   0x7   : > { %s2741_s25 = smov (!%p313_p2), 8   ;;  %s2742_s26 = smov (!%p313_p2), 12  }
   0x8   : > { %s2743_s27 = smov (!%p313_p2), 20   ;;  %s2744_s28 = smov (!%p313_p2), 24  }
   0x9   : > { %s2745_s29 = smov (!%p313_p2), 28   ;;  %s2746_s17 = smov (!%p313_p2), 32  }
   0xa   : > { %s2748_s11 = smov (!%p313_p2), 48   ;;  %s2749_s12 = smov (!%p313_p2), 36  }
   0xb   : > { %vm361_vm0 = vcmask 31744   ;;  %v2738_v0 = vmov 0.0   ;;  %s3574_s14 = smov (!%p350_p3, %s2248_s14), 1  ;;  %v2273_v2 = vld [vmem:[%s3563_s1] ss:$0 sm:$0xff]  ;;  %v371_v4 = vlaneseq  ;;  %vm576_vm9 = vcmask 27648  }
   0xc   : > { %363 = vst.msk [vmem:[#allocation2 + $0x8] sm:$0xff] %vm361_vm0, %v2738_v0  ;;  %362 = vst.msk [vmem:[#allocation2] sm:$0xff] %vm361_vm0, %v2738_v0  ;;  %s2460_s15 = sshll.u32 %s3574_s14, 5  ;;  %v2274_v9 = vld [vmem:[%s3564_s2] ss:$0 sm:$0xff]  ;;  %vm1206_vm14 = vcmask 1041408  }
   0xd   : > { %364 = vst.msk [vmem:[#allocation2 + $0x50] sm:$0xff] %vm361_vm0, %v2738_v0  ;;  %365 = vst.msk [vmem:[#allocation2 + $0x58] sm:$0xff] %vm361_vm0, %v2738_v0  ;;  %s354_s18 = scalar_lea.vmem %s3562_s0, %s2460_s15  ;;  %v2852_v15 = vshrl.u32 %v371_v4, 7  ;;  %s2750_s16 = smov 96  }
   0xe   : > { %v2832_v1 = vld [vmem:[%s354_s18] sm:$0xff]   ;;  %v2837_v3 = vld [vmem:[%s354_s18 + $0x8] sm:$0xff]   ;;  %v2857_v20 = vld [vmem:[%s354_s18 + $0x10] sm:$0xff]  }
   0xf   : > { %v2617_v5 = vunpack.c.h.bf16 %v2832_v1  ;;  %v2616_v6 = vunpack.c.l.bf16 %v2832_v1  ;;  %v2620_v7 = vunpack.c.l.bf16 %v2837_v3  ;;  %v2621_v10 = vunpack.c.h.bf16 %v2837_v3  ;;  %v2859_v22 = vld [vmem:[%s354_s18 + $0x18] sm:$0xff]   ;;  %s2752_s18 = smov 72  }
  0x10   : > { %v380_v26 = vand.u32 7, %v2852_v15  ;;  %v2624_v28 = vunpack.c.l.bf16 %v2857_v20  ;;  %v373_v29 = vadd.s32 8, %v2852_v15  ;;  %v374_v30 = vadd.s32 16, %v2852_v15 }
  0x11   : > { %v460_v12 = vmul.f32 %v2617_v5, %v2273_v2  ;;  %v459_v13 = vmul.f32 %v2616_v6, %v2273_v2  ;;  %v461_v14 = vmul.f32 %v2620_v7, %v2273_v2  ;;  %v462_v16 = vmul.f32 %v2621_v10, %v2273_v2 }
  0x12   : > { %v2625_v31 = vunpack.c.h.bf16 %v2857_v20  ;;  %v2628_v32 = vunpack.c.l.bf16 %v2859_v22  ;;  %v463_v33 = vmul.f32 %v2624_v28, %v2273_v2  ;;  %v2629_v34 = vunpack.c.h.bf16 %v2859_v22 }
  0x13   : > { %v585_v8 = vld [vmem:[#allocation2 + $0x8] sm:$0xff]  ;;  %v475_v17 = vadd.f32 %v2274_v9, %v460_v12  ;;  %v474_v18 = vadd.f32 %v2274_v9, %v459_v13  ;;  %v476_v19 = vadd.f32 %v2274_v9, %v461_v14  ;;  %v477_v21 = vadd.f32 %v2274_v9, %v462_v16 }
  0x14   : > { %v2470_v11 = vpack.c.bf16 %v585_v8, %v585_v8  ;;  %v464_v35 = vmul.f32 %v2625_v31, %v2273_v2  ;;  %v465_v36 = vmul.f32 %v2628_v32, %v2273_v2  ;;  %vm412_vm1 = vcmp.le.s32.totalorder %v380_v26, 6 }
  0x15   : > { %v483_v23 = vmax.f32 %v475_v17, 0.0  ;;  %v482_v24 = vmax.f32 %v474_v18, 0.0  ;;  %v484_v25 = vmax.f32 %v476_v19, 0.0  ;;  %v485_v27 = vmax.f32 %v477_v21, 0.0 }
  0x16   : > { %617 = vrot.lane.b32.xlu0 %v2470_v11, %s2739_s23  ;;  %v375_v37 = vadd.s32 24, %v2852_v15  ;;  %v478_v38 = vadd.f32 %v2274_v9, %v463_v33  ;;  %v381_v39 = vand.u32 7, %v373_v29  ;;  %v382_v40 = vand.u32 7, %v374_v30  ;;  %v528_v33 = vld [vmem:[#allocation2 + $0x7] sm:$0xff] }
  0x17   : > { %521 = vst.msk [vmem:[#allocation2 + $0x18] sm:$0xff] %vm361_vm0, %v483_v23  ;;  %520 = vst.msk [vmem:[#allocation2 + $0x10] sm:$0xff] %vm361_vm0, %v482_v24  ;;  %v479_v41 = vadd.f32 %v2274_v9, %v464_v35  ;;  %v480_v42 = vadd.f32 %v2274_v9, %v465_v36  ;;  %v466_v44 = vmul.f32 %v2629_v34, %v2273_v2  ;;  %v2882_v50 = vsel %vm412_vm1, 1.0, %v2738_v0 }
  0x18   : > { %522 = vst.msk [vmem:[#allocation2 + $0x20] sm:$0xff] %vm361_vm0, %v484_v25  ;;  %523 = vst.msk [vmem:[#allocation2 + $0x28] sm:$0xff] %vm361_vm0, %v485_v27  ;;  %v486_v43 = vmax.f32 %v478_v38, 0.0  ;;  %v383_v51 = vand.u32 7, %v375_v37  ;;  %vm413_vm2 = vcmp.le.s32.totalorder %v381_v39, 6  ;;  %vm414_vm3 = vcmp.le.s32.totalorder %v382_v40, 6 }
  0x19   : > { %v487_v45 = vmax.f32 %v479_v41, 0.0  ;;  %v488_v46 = vmax.f32 %v480_v42, 0.0  ;;  %v481_v52 = vadd.f32 %v2274_v9, %v466_v44  ;;  %v2896_v59 = vsel %vm413_vm2, 1.0, %v2738_v0 }
  0x1a   : > { %524 = vst.msk [vmem:[#allocation2 + $0x30] sm:$0xff] %vm361_vm0, %v486_v43  ;;  %v2899_v61 = vsel %vm414_vm3, 1.0, %v2738_v0  ;;  %vm415_vm4 = vcmp.le.s32.totalorder %v383_v51, 6  ;;  %vm388_vm5 = vcmp.ge.s32.totalorder %v380_v26, 1  ;;  %vm389_vm6 = vcmp.ge.s32.totalorder %v381_v39, 1 }
  0x1b   : > { %525 = vst.msk [vmem:[#allocation2 + $0x38] sm:$0xff] %vm361_vm0, %v487_v45  ;;  %526 = vst.msk [vmem:[#allocation2 + $0x40] sm:$0xff] %vm361_vm0, %v488_v46  ;;  %v489_v58 = vmax.f32 %v481_v52, 0.0  ;;  %v2911_v8 = vsel %vm415_vm4, 1.0, %v2738_v0  ;;  %v2916_v11 = vsel %vm388_vm5, 1.0, %v2738_v0  ;;  %vm390_vm7 = vcmp.ge.s32.totalorder %v382_v40, 1 }
  0x1c   : > { %v2925_v18 = vsel %vm389_vm6, 1.0, %v2738_v0  ;;  %v2928_v21 = vsel %vm390_vm7, 1.0, %v2738_v0  ;;  %vm391_vm8 = vcmp.ge.s32.totalorder %v383_v51, 1  ;;  %v536_v38 = vmul.f32 %v2916_v11, %v528_v33 }
  0x1d   : > { %527 = vst.msk [vmem:[#allocation2 + $0x48] sm:$0xff] %vm361_vm0, %v489_v58  ;;  %v2935_v29 = vsel %vm391_vm8, 1.0, %v2738_v0  ;;  %vm641_vm3 = vcmask 60448   ;;  %vm714_vm4 = vcmask 93248   ;;  %vm787_vm5 = vcmask 126048  }
  0x1e   : > { %v587_v47 = vld [vmem:[#allocation2 + $0x18] sm:$0xff]  ;;  %v586_v48 = vld [vmem:[#allocation2 + $0x10] sm:$0xff]  ;;  %v2462_v43 = vpack.c.bf16 %v536_v38, %v536_v38  ;;  %vm852_vm6 = vcmask 158848   ;;  %vm925_vm7 = vcmask 191648   ;;  %vm998_vm8 = vcmask 224448  }
  0x1f   : > { %v588_v49 = vld [vmem:[#allocation2 + $0x20] sm:$0xff]  ;;  %v2885_v53 = vpack.c.bf16 %v587_v47, %v587_v47  ;;  %v2471_v54 = vpack.c.bf16 %v586_v48, %v586_v48  ;;  %v650_v55 = vld [vmem:[#allocation2 + $0x9] sm:$0xff]  ;;  %v651_v60 = vld [vmem:[#allocation2 + $0x11] sm:$0xff] }
  0x20   : > { %v2892_v56 = vpack.c.bf16 %v588_v49, %v588_v49  ;;  %v658_v57 = vmul.f32 %v2882_v50, %v650_v55  ;;  %v2901_v62 = vld [vmem:[#allocation2 + $0x19] sm:$0xff]  ;;  %v659_v2 = vmul.f32 %v2896_v59, %v651_v60  ;;  %v2913_v9 = vld [vmem:[#allocation2 + $0x21] sm:$0xff]  ;;  %v723_v12 = vld [vmem:[#allocation2 + $0xf] sm:$0xff]  ;;  %v869_v42 = vmul.f32 %v2882_v50, %v651_v60  ;;  %577 = vst.msk [vmem:[#allocation3] sm:$0xf] %vm576_vm9, %v2462_v43 }
  0x21   : > { %621 = vrot.lane.b32.xlu1 %v2885_v53, %s2739_s23  ;;  %619 = vrot.lane.b32.xlu0 %v2471_v54, %s2739_s23  ;;  %v660_v4 = vmul.f32 %v2899_v61, %v2901_v62  ;;  %v661_v13 = vmul.f32 %v2911_v8, %v2913_v9  ;;  %v731_v17 = vmul.f32 %v2916_v11, %v723_v12  ;;  %v724_v19 = vld [vmem:[#allocation2 + $0x17] sm:$0xff]  ;;  %v725_v23 = vld [vmem:[#allocation2 + $0x1f] sm:$0xff]  ;;  %v2937_v30 = vld [vmem:[#allocation2 + $0x27] sm:$0xff] }
  0x22   : > { %v2478_v63 = vpack.c.bf16 %v658_v57, %v658_v57  ;;  %v2479_v14 = vpack.c.bf16 %v659_v2, %v659_v2  ;;  %v732_v24 = vmul.f32 %v2925_v18, %v724_v19  ;;  %v733_v27 = vmul.f32 %v2928_v21, %v725_v23  ;;  %v799_v44 = vld [vmem:[#allocation2 + $0x28] sm:$0xff] }
  0x23   : > { %v2480_v16 = vpack.c.bf16 %v660_v4, %v660_v4  ;;  %v2481_v25 = vpack.c.bf16 %v661_v13, %v661_v13  ;;  %v2486_v26 = vpack.c.bf16 %v731_v17, %v731_v17  ;;  %v734_v36 = vmul.f32 %v2935_v29, %v2937_v30  ;;  %v2962_v55 = vld [vmem:[#allocation2 + $0x29] sm:$0xff] }
  0x24   : > { %v2487_v35 = vpack.c.bf16 %v732_v24, %v732_v24  ;;  %v2488_v37 = vpack.c.bf16 %v733_v27, %v733_v27  ;;  %v538_v39 = vmul.f32 %v2928_v21, %v724_v19  ;;  %v537_v40 = vmul.f32 %v2925_v18, %v723_v12  ;;  %v2980_v17 = vld [vmem:[#allocation2 + $0x2f] sm:$0xff] }
  0x25   : > { %623 = vrot.lane.b32.xlu1 %v2892_v56, %s2739_s23  ;;  %828 = vrot.lane.b32.xlu0 %v2471_v54, %s2740_s24  ;;  %v2489_v41 = vpack.c.bf16 %v734_v36, %v734_v36  ;;  %v539_v47 = vmul.f32 %v2935_v29, %v725_v23  ;;  %v870_v48 = vmul.f32 %v2896_v59, %v2901_v62  ;;  %v2973_v4 = vadd.s32 40, %v2852_v15 }
  0x26   : > { %v2464_v45 = vpack.c.bf16 %v538_v39, %v538_v39  ;;  %v2463_v46 = vpack.c.bf16 %v537_v40, %v537_v40  ;;  %v2956_v51 = vpack.c.bf16 %v799_v44, %v799_v44  ;;  %v2502_v52 = vpack.c.bf16 %v869_v42, %v869_v42  ;;  %v1010_v44 = vld [vmem:[#allocation2 + $0x30] sm:$0xff] }
  0x27   : > { %v2465_v49 = vpack.c.bf16 %v539_v47, %v539_v47  ;;  %v871_v54 = vmul.f32 %v2899_v61, %v2913_v9  ;;  %v2503_v57 = vpack.c.bf16 %v870_v48, %v870_v48  ;;  %v872_v58 = vmul.f32 %v2911_v8, %v2962_v55  ;;  %v3024_v47 = vld [vmem:[#allocation2 + $0x37] sm:$0xff] }
  0x28   : > { %579 = vst.msk [vmem:[#allocation3 + $0x8] sm:$0xf] %vm576_vm9, %v2464_v45  ;;  %578 = vst.msk [vmem:[#allocation3 + $0x4] sm:$0xf] %vm576_vm9, %v2463_v46  ;;  %v943_v2 = vmul.f32 %v2925_v18, %v725_v23  ;;  %v945_v24 = vmul.f32 %v2935_v29, %v2980_v17  ;;  %v2990_v27 = vadd.s32 56, %v2852_v15 }
  0x29   : > { %830 = vrot.lane.b32.xlu1 %v2885_v53, %s2740_s24  ;;  %690 = vrot.lane.b32.xlu0 %v2478_v63, %s2741_s25  ;;  %580 = vst.msk [vmem:[#allocation3 + $0xc] sm:$0xf] %vm576_vm9, %v2465_v49  ;;  %v2504_v60 = vpack.c.bf16 %v871_v54, %v871_v54  ;;  %v942_v63 = vmul.f32 %v2916_v11, %v724_v19  ;;  %v385_v19 = vand.u32 7, %v2973_v4 }
  0x2a   : > { %v2505_v12 = vpack.c.bf16 %v872_v58, %v872_v58  ;;  %v2511_v23 = vpack.c.bf16 %v943_v2, %v943_v2  ;;  %v2513_v33 = vpack.c.bf16 %v945_v24, %v945_v24  ;;  %v387_v40 = vand.u32 7, %v2990_v27  ;;  %v1075_v2 = vld [vmem:[#allocation2 + $0x31] sm:$0xff] }
  0x2b   : > { %v2510_v13 = vpack.c.bf16 %v942_v63, %v942_v63  ;;  %vm393_vm10 = vcmp.ge.s32.totalorder %v385_v19, 1  ;;  %v1082_v58 = vmul.f32 %v2899_v61, %v2962_v55  ;;  %vm417_vm0 = vcmp.le.s32.totalorder %v385_v19, 6  ;;  %v3073_v19 = vld [vmem:[#allocation2 + $0x39] sm:$0xff] }
  0x2c   : > { %v2996_v36 = vsel %vm393_vm10, 1.0, %v2738_v0  ;;  %vm395_vm12 = vcmp.ge.s32.totalorder %v387_v40, 1  ;;  %v3068_v27 = vsel %vm417_vm0, 1.0, %v2738_v0  ;;  %vm419_vm2 = vcmp.le.s32.totalorder %v387_v40, 6 }
  0x2d   : > { %692 = vrot.lane.b32.xlu1 %v2479_v14, %s2741_s25  ;;  %694 = vrot.lane.b32.xlu0 %v2480_v16, %s2741_s25  ;;  %v944_v14 = vmul.f32 %v2928_v21, %v2937_v30  ;;  %v376_v16 = vadd.s32 32, %v2852_v15  ;;  %v541_v38 = vmul.f32 %v2996_v36, %v2980_v17  ;;  %v3027_v48 = vsel %vm395_vm12, 1.0, %v2738_v0 }
  0x2e   : > { %vm1136_vm10 = vcmask 290048   ;;  %vm366_vm12 = vcmask 97280   ;;  %vm1354_vm0 = vcmask 97344  }
  0x2f   : > { %v2467_v42 = vpack.c.bf16 %v541_v38, %v541_v38  ;;  %369 = vst.msk [vmem:[#allocation4 + $0x50] sm:$0xff] %vm366_vm12, %v2738_v0  ;;  %367 = vst.msk [vmem:[#allocation4] sm:$0xff] %vm366_vm12, %v2738_v0 }
  0x30   : > { %368 = vst.msk [vmem:[#allocation4 + $0x8] sm:$0xff] %vm366_vm12, %v2738_v0  ;;  %370 = vst.msk [vmem:[#allocation4 + $0x58] sm:$0xff] %vm366_vm12, %v2738_v0 }
  0x31   : > { %696 = vrot.lane.b32.xlu1 %v2481_v25, %s2741_s25  ;;  %763 = vrot.lane.b32.xlu0 %v2486_v26, %s2742_s26  ;;  %v2512_v25 = vpack.c.bf16 %v944_v14, %v944_v14  ;;  %v384_v26 = vand.u32 7, %v376_v16  ;;  %582 = vst.msk [vmem:[#allocation3 + $0x14] sm:$0xf] %vm576_vm9, %v2467_v42  ;;  %v2528_v14 = vpack.c.bf16 %v1082_v58, %v1082_v58  ;;  %v591_v16 = vld [vmem:[#allocation2 + $0x38] sm:$0xff] }
  0x33   : > { %vm392_vm11 = vcmp.ge.s32.totalorder %v384_v26, 1  ;;  %vm416_vm15 = vcmp.le.s32.totalorder %v384_v26, 6 }
  0x35   : > { %765 = vrot.lane.b32.xlu1 %v2487_v35, %s2742_s26  ;;  %767 = vrot.lane.b32.xlu0 %v2488_v37, %s2742_s26  ;;  %v378_v35 = vadd.s32 48, %v2852_v15  ;;  %v2999_v37 = vsel %vm392_vm11, 1.0, %v2738_v0  ;;  %v1080_v15 = vmul.f32 %v2882_v50, %v2901_v62  ;;  %v3020_v62 = vpack.c.bf16 %v1010_v44, %v1010_v44 }
  0x36   : > { %v540_v39 = vmul.f32 %v2999_v37, %v2937_v30  ;;  %v2712_v30 = vld [vmem:[%s3567_s5 + $0x10] ss:$0 sps:$4 sm:$0x33]   ;;  %v736_v44 = vmul.f32 %v2996_v36, %v3024_v47  ;;  %vm1193_vm11 = vcmask 293888  }
  0x37   : > { %v2526_v45 = vpack.c.bf16 %v1080_v15, %v1080_v15  ;;  %v1208_v46 = vsel %vm1206_vm14, %v2712_v30, 0  ;;  %2687 = vmatprep.subr.msk.bf16.mxu0 %vm1206_vm14, %v2712_v30  ;;  %vm1411_vm14 = vcmask 93184  }
  0x38   : > { %v2466_v43 = vpack.c.bf16 %v540_v39, %v540_v39  ;;  %2652 = vmatpush3.bf16.msra.mxu0 %v1208_v46  ;;  %v3084_v39 = vld [vmem:[#allocation2 + $0x41] sm:$0xff] }
  0x39   : > { %769 = vrot.lane.b32.xlu1 %v2489_v41, %s2742_s26  ;;  %832 = vrot.lane.b32.xlu0 %v2892_v56, %s2740_s24  ;;  %v386_v41 = vand.u32 7, %v378_v35  ;;  %v663_v35 = vmul.f32 %v3068_v27, %v1075_v2  ;;  %v730_v46 = vld [vmem:[#allocation2 + $0x47] sm:$0xff] }
  0x3a   : > { %581 = vst.msk [vmem:[#allocation3 + $0x10] sm:$0xf] %vm576_vm9, %v2466_v43  ;;  %v735_v43 = vmul.f32 %v2999_v37, %v2980_v17  ;;  %v738_v17 = vmul.f32 %v3027_v48, %v730_v46 }
  0x3b   : > { %vm394_vm13 = vcmp.ge.s32.totalorder %v386_v41, 1  ;;  %vm418_vm1 = vcmp.le.s32.totalorder %v386_v41, 6  ;;  %v2483_v41 = vpack.c.bf16 %v663_v35, %v663_v35 }
  0x3c   : > { %v3030_v49 = vsel %vm394_vm13, 1.0, %v2738_v0  ;;  %v3071_v4 = vsel %vm418_vm1, 1.0, %v2738_v0  ;;  %vm1476_vm13 = vcmask 191584   ;;  %vm2083_vm1 = vcmask 1045504  }
  0x3d   : > { %834 = vrot.lane.b32.xlu1 %v2956_v51, %s2740_s24  ;;  %901 = vrot.lane.b32.xlu0 %v2502_v52, %s2743_s27  ;;  %v542_v54 = vmul.f32 %v3030_v49, %v3024_v47  ;;  %v664_v40 = vmul.f32 %v3071_v4, %v3073_v19 }
  0x3f   : > { %v2468_v63 = vpack.c.bf16 %v542_v54, %v542_v54  ;;  %v2484_v42 = vpack.c.bf16 %v664_v40, %v664_v40  ;;  %v2493_v54 = vpack.c.bf16 %v738_v17, %v738_v17  ;;  %v941_v40 = vld [vmem:[#allocation2 + $0x4f] sm:$0xff] }
  0x41   : > { %903 = vrot.lane.b32.xlu1 %v2503_v57, %s2743_s27  ;;  %905 = vrot.lane.b32.xlu0 %v2504_v60, %s2743_s27  ;;  %583 = vst.msk [vmem:[#allocation3 + $0x18] sm:$0xf] %vm576_vm9, %v2468_v63  ;;  %v874_v63 = vmul.f32 %v3068_v27, %v3073_v19 }
  0x45   : > { %907 = vrot.lane.b32.xlu1 %v2505_v12, %s2743_s27  ;;  %974 = vrot.lane.b32.xlu0 %v2510_v13, %s2744_s28  ;;  %v2715_v12 = vld [vmem:[%s3567_s5] sm:$0xff]   ;;  %v1083_v13 = vmul.f32 %v2911_v8, %v1075_v2 }
  0x47   : > { %v2529_v24 = vpack.c.bf16 %v1083_v13, %v1083_v13  ;;  %v868_v13 = vld [vmem:[#allocation2 + $0x49] sm:$0xff] }
  0x49   : > { %976 = vrot.lane.b32.xlu1 %v2511_v23, %s2744_s28  ;;  %978 = vrot.lane.b32.xlu0 %v2512_v25, %s2744_s28  ;;  %v3056_v23 = vsel %vm416_vm15, 1.0, %v2738_v0  ;;  %v3063_v25 = vpack.c.bf16 %v591_v16, %v591_v16  ;;  %vm1313_vm15 = vcmask 64512  }
  0x4a   : > { %v662_v26 = vmul.f32 %v3056_v23, %v2962_v55  ;;  %v3082_v55 = vsel %vm419_vm2, 1.0, %v2738_v0  ;;  %v873_v58 = vmul.f32 %v3056_v23, %v1075_v2  ;;  %v2507_v2 = vpack.c.bf16 %v874_v63, %v874_v63 }
  0x4b   : > { %v665_v15 = vmul.f32 %v3082_v55, %v3084_v39  ;;  %vm1549_vm2 = vcmask 289984  }
  0x4c   : > { %v2482_v38 = vpack.c.bf16 %v662_v26, %v662_v26 }
  0x4d   : > { %980 = vrot.lane.b32.xlu1 %v2513_v33, %s2744_s28  ;;  %1039 = vrot.lane.b32.xlu0 %v2885_v53, %s2745_s29  ;;  %v1081_v53 = vmul.f32 %v2896_v59, %v2913_v9  ;;  %v3032_v9 = vld [vmem:[#allocation2 + $0x3f] sm:$0xff]  ;;  %v2485_v30 = vpack.c.bf16 %v665_v15, %v665_v15 }
  0x4e   : > { %v543_v52 = vmul.f32 %v3027_v48, %v3032_v9 }
  0x4f   : > { %v2527_v57 = vpack.c.bf16 %v1081_v53, %v1081_v53  ;;  %v2490_v53 = vpack.c.bf16 %v735_v43, %v735_v43  ;;  %v1014_v43 = vld [vmem:[#allocation2 + $0x50] sm:$0xff] }
  0x50   : > { %v2469_v60 = vpack.c.bf16 %v543_v52, %v543_v52 }
  0x51   : > { %1041 = vrot.lane.b32.xlu1 %v2892_v56, %s2745_s29  ;;  %1043 = vrot.lane.b32.xlu0 %v2956_v51, %s2745_s29  ;;  %v2713_v56 = vld [vmem:[%s3567_s5 + $0x8] sm:$0xff]  }
  0x52   : > { %2653 = vmatprep.subr.bf16.mxu0 %v2713_v56  ;;  %584 = vst.msk [vmem:[#allocation3 + $0x1c] sm:$0xf] %vm576_vm9, %v2469_v60  ;;  %vm1063_vm9 = vcmask 257248  }
  0x53   : > { %2654 = vmatpush3.bf16.msra.mxu0 %v2713_v56  ;;  %v2491_v56 = vpack.c.bf16 %v736_v44, %v736_v44  ;;  %v1084_v44 = vmul.f32 %v3056_v23, %v3073_v19 }
  0x54   : > { %2655 = vmatprep.subr.bf16.mxu0 %v2715_v12 }
  0x55   : > { %1045 = vrot.lane.b32.xlu1 %v3020_v62, %s2745_s29  ;;  %1112 = vrot.lane.b32.xlu0 %v2526_v45, %s2746_s17  ;;  %v737_v45 = vmul.f32 %v3030_v49, %v3032_v9 }
  0x57   : > { %2656 = vmatpush3.bf16.msra.mxu0 %v2715_v12  ;;  %v2492_v52 = vpack.c.bf16 %v737_v45, %v737_v45  ;;  %v2506_v12 = vpack.c.bf16 %v873_v58, %v873_v58  ;;  %v2530_v45 = vpack.c.bf16 %v1084_v44, %v1084_v44  ;;  %v2275_v58 = vld [vmem:[%s3565_s3] ss:$0 sm:$0xff] }
  0x58   : > { %v497_v63 = vmul.f32 %v2616_v6, %v2275_v58  ;;  %v502_v3 = vmul.f32 %v2625_v31, %v2275_v58  ;;  %v504_v20 = vmul.f32 %v2629_v34, %v2275_v58 }
  0x59   : > { %1114 = vrot.lane.b32.xlu1 %v2527_v57, %s2746_s17  ;;  %625 = vrot.lane.b32.xlu0 %v2956_v51, %s2739_s23  ;;  %v592_v51 = vld [vmem:[#allocation2 + $0x40] sm:$0xff]  ;;  %v803_v57 = vld [vmem:[#allocation2 + $0x48] sm:$0xff] }
  0x5a   : > { %v3075_v33 = vpack.c.bf16 %v592_v51, %v592_v51  ;;  %v2501_v60 = vpack.c.bf16 %v803_v57, %v803_v57  ;;  %v947_v51 = vmul.f32 %v2996_v36, %v3032_v9 }
  0x5c   : > { %v2515_v15 = vpack.c.bf16 %v947_v51, %v947_v51 }
  0x5d   : > { %627 = vrot.lane.b32.xlu1 %v3020_v62, %s2739_s23  ;;  %1116 = vrot.lane.b32.xlu0 %v2528_v14, %s2746_s17  ;;  %v875_v14 = vmul.f32 %v3071_v4, %v3084_v39 }
  0x5f   : > { %v2508_v16 = vpack.c.bf16 %v875_v14, %v875_v14 }
  0x61   : > { %1118 = vrot.lane.b32.xlu1 %v2529_v24, %s2746_s17  ;;  %629 = vrot.lane.b32.xlu0 %v3063_v25, %s2739_s23  ;;  %v946_v24 = vmul.f32 %v2999_v37, %v3024_v47  ;;  %v949_v47 = vmul.f32 %v3027_v48, %v941_v40 }
  0x63   : > { %v2514_v35 = vpack.c.bf16 %v946_v24, %v946_v24  ;;  %v2517_v9 = vpack.c.bf16 %v949_v47, %v949_v47  ;;  %v500_v24 = vmul.f32 %v2621_v10, %v2275_v58 }
  0x65   : > { %631 = vrot.lane.b32.xlu1 %v3075_v33, %s2739_s23  ;;  %698 = vrot.lane.b32.xlu0 %v2482_v38, %s2741_s25  ;;  %v948_v38 = vmul.f32 %v3030_v49, %v730_v46  ;;  %v1086_v46 = vmul.f32 %v3071_v4, %v868_v13 }
  0x69   : > { %700 = vrot.lane.b32.xlu1 %v2483_v41, %s2741_s25  ;;  %702 = vrot.lane.b32.xlu0 %v2484_v42, %s2741_s25  ;;  %v2516_v41 = vpack.c.bf16 %v948_v38, %v948_v38 }
  0x6d   : > { %704 = vrot.lane.b32.xlu1 %v2485_v30, %s2741_s25  ;;  %771 = vrot.lane.b32.xlu0 %v2490_v53, %s2742_s26  ;;  %v2525_v30 = vpack.c.bf16 %v1014_v43, %v1014_v43  ;;  %v1085_v53 = vmul.f32 %v3068_v27, %v3084_v39 }
  0x71   : > { %773 = vrot.lane.b32.xlu1 %v2491_v56, %s2742_s26  ;;  %775 = vrot.lane.b32.xlu0 %v2492_v52, %s2742_s26  ;;  %v1079_v56 = vld [vmem:[#allocation2 + $0x51] sm:$0xff] }
  0x72   : > { %v1087_v19 = vmul.f32 %v3082_v55, %v1079_v56 }
  0x74   : > { %v2533_v57 = vpack.c.bf16 %v1087_v19, %v1087_v19 }
  0x75   : > { %777 = vrot.lane.b32.xlu1 %v2493_v54, %s2742_s26  ;;  %836 = vrot.lane.b32.xlu0 %v3020_v62, %s2740_s24  ;;  %v876_v62 = vmul.f32 %v3082_v55, %v868_v13  ;;  %v498_v13 = vmul.f32 %v2617_v5, %v2275_v58 }
  0x77   : > { %v2509_v26 = vpack.c.bf16 %v876_v62, %v876_v62 }
  0x79   : > { %838 = vrot.lane.b32.xlu1 %v3063_v25, %s2740_s24  ;;  %840 = vrot.lane.b32.xlu0 %v3075_v33, %s2740_s24 }
  0x7d   : > { %842 = vrot.lane.b32.xlu1 %v2501_v60, %s2740_s24  ;;  %909 = vrot.lane.b32.xlu0 %v2506_v12, %s2743_s27  ;;  %v499_v12 = vmul.f32 %v2620_v7, %v2275_v58  ;;  %v501_v7 = vmul.f32 %v2624_v28, %v2275_v58  ;;  %v503_v28 = vmul.f32 %v2628_v32, %v2275_v58  ;;  %s2747_s24 = smov 84  }
  0x81   : > { %911 = vrot.lane.b32.xlu1 %v2507_v2, %s2743_s27  ;;  %913 = vrot.lane.b32.xlu0 %v2508_v16, %s2743_s27 }
  0x85   : > { %915 = vrot.lane.b32.xlu1 %v2509_v26, %s2743_s27  ;;  %982 = vrot.lane.b32.xlu0 %v2514_v35, %s2744_s28 }
  0x88   : > { %v618_v42 = vpop.permute.xlu0 %617 }
  0x89   : > { %642 = vst.msk [vmem:[#allocation3] sm:$0xf] %vm641_vm3, %v618_v42  ;;  %984 = vrot.lane.b32.xlu1 %v2515_v15, %s2744_s28  ;;  %986 = vrot.lane.b32.xlu0 %v2516_v41, %s2744_s28 }
  0x8d   : > { %988 = vrot.lane.b32.xlu1 %v2517_v9, %s2744_s28  ;;  %1047 = vrot.lane.b32.xlu0 %v3063_v25, %s2745_s29  ;;  %v2531_v25 = vpack.c.bf16 %v1085_v53, %v1085_v53 }
  0x91   : > { %1049 = vrot.lane.b32.xlu1 %v3075_v33, %s2745_s29  ;;  %1051 = vrot.lane.b32.xlu0 %v2501_v60, %s2745_s29  ;;  %v2532_v33 = vpack.c.bf16 %v1086_v46, %v1086_v46  ;;  %v2276_v60 = vld [vmem:[%s3566_s4] ss:$0 sm:$0xff] }
  0x92   : > { %v512_v2 = vadd.f32 %v2276_v60, %v497_v63  ;;  %v513_v16 = vadd.f32 %v2276_v60, %v498_v13  ;;  %v514_v6 = vadd.f32 %v2276_v60, %v499_v12  ;;  %v515_v5 = vadd.f32 %v2276_v60, %v500_v24 }
  0x93   : > { %v622_v17 = vpop.permute.xlu1 %621  ;;  %v620_v52 = vpop.permute.xlu0 %619  ;;  %v516_v10 = vadd.f32 %v2276_v60, %v501_v7  ;;  %v517_v38 = vadd.f32 %v2276_v60, %v502_v3  ;;  %v518_v31 = vadd.f32 %v2276_v60, %v503_v28  ;;  %v519_v32 = vadd.f32 %v2276_v60, %v504_v20 }
  0x94   : > { %644 = vst.msk [vmem:[#allocation3 + $0x8] sm:$0xf] %vm641_vm3, %v622_v17  ;;  %643 = vst.msk [vmem:[#allocation3 + $0x4] sm:$0xf] %vm641_vm3, %v620_v52 }
  0x95   : > { %1053 = vrot.lane.b32.xlu1 %v2525_v30, %s2745_s29  ;;  %1120 = vrot.lane.b32.xlu0 %v2530_v45, %s2746_s17 }
  0x97   : > { %v624_v54 = vpop.permute.xlu1 %623  ;;  %v829_v39 = vpop.permute.xlu0 %828 }
  0x98   : > { %645 = vst.msk [vmem:[#allocation3 + $0xc] sm:$0xf] %vm641_vm3, %v624_v54 }
  0x99   : > { %1122 = vrot.lane.b32.xlu1 %v2531_v25, %s2746_s17  ;;  %1124 = vrot.lane.b32.xlu0 %v2532_v33, %s2746_s17 }
  0x9b   : > { %v831_v14 = vpop.permute.xlu1 %830  ;;  %v691_v62 = vpop.permute.xlu0 %690 }
  0x9c   : > { %715 = vst.msk [vmem:[#allocation3] sm:$0xf] %vm714_vm4, %v691_v62 }
  0x9d   : > { %1126 = vrot.lane.b32.xlu1 %v2533_v57, %s2746_s17  ;;  %1330 = vrot.lane.b32.xlu0 %v512_v2, %s2741_s25  ;;  %s2751_s17 = smov 60  }
  0x9f   : > { %v693_v51 = vpop.permute.xlu1 %692  ;;  %v695_v1 = vpop.permute.xlu0 %694 }
  0xa0   : > { %716 = vst.msk [vmem:[#allocation3 + $0x4] sm:$0xf] %vm714_vm4, %v693_v51  ;;  %717 = vst.msk [vmem:[#allocation3 + $0x8] sm:$0xf] %vm714_vm4, %v695_v1 }
  0xa1   : > { %1332 = vrot.lane.b32.xlu1 %v513_v16, %s2741_s25  ;;  %1334 = vrot.lane.b32.xlu0 %v514_v6, %s2741_s25 }
  0xa3   : > { %v697_v26 = vpop.permute.xlu1 %696  ;;  %v764_v35 = vpop.permute.xlu0 %763 }
  0xa4   : > { %718 = vst.msk [vmem:[#allocation3 + $0xc] sm:$0xf] %vm714_vm4, %v697_v26 }
  0xa5   : > { %788 = vst.msk [vmem:[#allocation3] sm:$0xf] %vm787_vm5, %v764_v35  ;;  %1336 = vrot.lane.b32.xlu1 %v515_v5, %s2741_s25  ;;  %1338 = vrot.lane.b32.xlu0 %v516_v10, %s2741_s25 }
  0xa6   : > { %853 = vst.msk [vmem:[#allocation3] sm:$0xf] %vm852_vm6, %v829_v39 }
  0xa7   : > { %v766_v40 = vpop.permute.xlu1 %765  ;;  %v768_v15 = vpop.permute.xlu0 %767 }
  0xa8   : > { %789 = vst.msk [vmem:[#allocation3 + $0x4] sm:$0xf] %vm787_vm5, %v766_v40  ;;  %790 = vst.msk [vmem:[#allocation3 + $0x8] sm:$0xf] %vm787_vm5, %v768_v15 }
  0xa9   : > { %854 = vst.msk [vmem:[#allocation3 + $0x4] sm:$0xf] %vm852_vm6, %v831_v14  ;;  %1340 = vrot.lane.b32.xlu1 %v517_v38, %s2741_s25  ;;  %1342 = vrot.lane.b32.xlu0 %v518_v31, %s2741_s25 }
  0xab   : > { %v770_v47 = vpop.permute.xlu1 %769  ;;  %v833_v41 = vpop.permute.xlu0 %832 }
  0xac   : > { %791 = vst.msk [vmem:[#allocation3 + $0xc] sm:$0xf] %vm787_vm5, %v770_v47 }
  0xad   : > { %855 = vst.msk [vmem:[#allocation3 + $0x8] sm:$0xf] %vm852_vm6, %v833_v41  ;;  %1344 = vrot.lane.b32.xlu1 %v519_v32, %s2741_s25 }
  0xaf   : > { %v835_v22 = vpop.permute.xlu1 %834  ;;  %v902_v34 = vpop.permute.xlu0 %901 }
  0xb0   : > { %856 = vst.msk [vmem:[#allocation3 + $0xc] sm:$0xf] %vm852_vm6, %v835_v22 }
  0xb1   : > { %926 = vst.msk [vmem:[#allocation3] sm:$0xf] %vm925_vm7, %v902_v34 }
  0xb3   : > { %v904_v42 = vpop.permute.xlu1 %903  ;;  %v906_v9 = vpop.permute.xlu0 %905 }
  0xb4   : > { %927 = vst.msk [vmem:[#allocation3 + $0x4] sm:$0xf] %vm925_vm7, %v904_v42  ;;  %928 = vst.msk [vmem:[#allocation3 + $0x8] sm:$0xf] %vm925_vm7, %v906_v9 }
  0xb7   : > { %v908_v43 = vpop.permute.xlu1 %907  ;;  %v975_v44 = vpop.permute.xlu0 %974 }
  0xb8   : > { %929 = vst.msk [vmem:[#allocation3 + $0xc] sm:$0xf] %vm925_vm7, %v908_v43 }
  0xb9   : > { %999 = vst.msk [vmem:[#allocation3] sm:$0xf] %vm998_vm8, %v975_v44 }
  0xbb   : > { %v977_v30 = vpop.permute.xlu1 %976  ;;  %v979_v53 = vpop.permute.xlu0 %978 }
  0xbc   : > { %1000 = vst.msk [vmem:[#allocation3 + $0x4] sm:$0xf] %vm998_vm8, %v977_v30  ;;  %1001 = vst.msk [vmem:[#allocation3 + $0x8] sm:$0xf] %vm998_vm8, %v979_v53  ;;  %v1849_v30 = vld [vmem:[#allocation4 + $0x50] sm:$0xff]  ;;  %v1420_v53 = vld [vmem:[#allocation4 + $0x8] sm:$0xff] }
  0xbf   : > { %v981_v45 = vpop.permute.xlu1 %980  ;;  %v1040_v46 = vpop.permute.xlu0 %1039 }
  0xc0   : > { %1002 = vst.msk [vmem:[#allocation3 + $0xc] sm:$0xf] %vm998_vm8, %v981_v45  ;;  %v2597_v45 = vpack.c.bf16 %v1849_v30, %v1849_v30 }
  0xc1   : > { %1064 = vst.msk [vmem:[#allocation3] sm:$0xf] %vm1063_vm9, %v1040_v46  ;;  %v2542_v46 = vpack.c.bf16 %v1420_v53, %v1420_v53 }
  0xc2   : > { %1888 = vrot.lane.b32.xlu1 %v2597_v45, %s2747_s24 }
  0xc3   : > { %v1042_v56 = vpop.permute.xlu1 %1041  ;;  %v1044_v17 = vpop.permute.xlu0 %1043  ;;  %1452 = vrot.lane.b32.xlu0 %v2542_v46, %s2742_s26 }
  0xc4   : > { %1065 = vst.msk [vmem:[#allocation3 + $0x4] sm:$0xf] %vm1063_vm9, %v1042_v56  ;;  %1066 = vst.msk [vmem:[#allocation3 + $0x8] sm:$0xf] %vm1063_vm9, %v1044_v17 }
  0xc7   : > { %v1046_v52 = vpop.permute.xlu1 %1045  ;;  %v1113_v25 = vpop.permute.xlu0 %1112 }
  0xc8   : > { %1067 = vst.msk [vmem:[#allocation3 + $0xc] sm:$0xf] %vm1063_vm9, %v1046_v52 }
  0xc9   : > { %1137 = vst.msk [vmem:[#allocation3] sm:$0xf] %vm1136_vm10, %v1113_v25  ;;  %v3259_v25 = vld [vmem:[%s3568_s6] ss:$0 sm:$0xff] }
  0xcb   : > { %v1115_v19 = vpop.permute.xlu1 %1114  ;;  %v626_v33 = vpop.permute.xlu0 %625 }
  0xcc   : > { %1138 = vst.msk [vmem:[#allocation3 + $0x4] sm:$0xf] %vm1136_vm10, %v1115_v19  ;;  %v1363_v19 = vld [vmem:[#allocation4 + $0x7] sm:$0xff] }
  0xcd   : > { %646 = vst.msk [vmem:[#allocation3 + $0x10] sm:$0xf] %vm641_vm3, %v626_v33  ;;  %v1371_v33 = vmul.f32 %v2916_v11, %v1363_v19 }
  0xcf   : > { %v628_v54 = vpop.permute.xlu1 %627  ;;  %v1117_v39 = vpop.permute.xlu0 %1116 }
  0xd0   : > { %647 = vst.msk [vmem:[#allocation3 + $0x14] sm:$0xf] %vm641_vm3, %v628_v54 }
  0xd1   : > { %1139 = vst.msk [vmem:[#allocation3 + $0x8] sm:$0xf] %vm1136_vm10, %v1117_v39  ;;  %v3267_v39 = vld [vmem:[%s3569_s7] ss:$0 sm:$0xff] }
  0xd3   : > { %v1119_v57 = vpop.permute.xlu1 %1118  ;;  %v2714_v58 = vld [vmem:[#allocation3] sm:$0xff]   ;;  %v630_v60 = vpop.permute.xlu0 %629 }
  0xd4   : > { %1140 = vst.msk [vmem:[#allocation3 + $0xc] sm:$0xf] %vm1136_vm10, %v1119_v57  ;;  %2657 = vmatprep.mubr.msk.bf16.mxu0 %vm1193_vm11, %v2714_v58  ;;  %v2534_v58 = vpack.c.bf16 %v1371_v33, %v1371_v33 }
  0xd5   : > { %648 = vst.msk [vmem:[#allocation3 + $0x18] sm:$0xf] %vm641_vm3, %v630_v60 }
  0xd6   : > { %1412 = vst.msk [vmem:[#allocation5] sm:$0xf] %vm1411_vm14, %v2534_v58 }
  0xd7   : > { %v632_v63 = vpop.permute.xlu1 %631  ;;  %v699_v12 = vpop.permute.xlu0 %698 }
  0xd8   : > { %649 = vst.msk [vmem:[#allocation3 + $0x1c] sm:$0xf] %vm641_vm3, %v632_v63  ;;  %vm1622_vm3 = vcmask 388384  }
  0xd9   : > { %719 = vst.msk [vmem:[#allocation3 + $0x10] sm:$0xf] %vm714_vm4, %v699_v12 }
  0xdb   : > { %v701_v13 = vpop.permute.xlu1 %700  ;;  %v2716_v14 = vld [vmem:[#allocation3 + $0x8] sm:$0xff]   ;;  %v703_v62 = vpop.permute.xlu0 %702 }
  0xdc   : > { %720 = vst.msk [vmem:[#allocation3 + $0x14] sm:$0xf] %vm714_vm4, %v701_v13  ;;  %721 = vst.msk [vmem:[#allocation3 + $0x18] sm:$0xf] %vm714_vm4, %v703_v62  ;;  %2658 = vmatmul.mubr.msk.bf16.vlgmr.msra.gmra.mxu0 %vm1193_vm11, %v2716_v14 }
  0xdf   : > { %v705_v2 = vpop.permute.xlu1 %704  ;;  %v772_v16 = vpop.permute.xlu0 %771 }
  0xe0   : > { %722 = vst.msk [vmem:[#allocation3 + $0x1c] sm:$0xf] %vm714_vm4, %v705_v2  ;;  %vm1687_vm4 = vcmask 486784  }
  0xe1   : > { %792 = vst.msk [vmem:[#allocation3 + $0x10] sm:$0xf] %vm787_vm5, %v772_v16 }
  0xe3   : > { %v774_v24 = vpop.permute.xlu1 %773  ;;  %v776_v6 = vpop.permute.xlu0 %775 }
  0xe4   : > { %793 = vst.msk [vmem:[#allocation3 + $0x14] sm:$0xf] %vm787_vm5, %v774_v24  ;;  %794 = vst.msk [vmem:[#allocation3 + $0x18] sm:$0xf] %vm787_vm5, %v776_v6 }
  0xe7   : > { %v778_v7 = vpop.permute.xlu1 %777  ;;  %v837_v51 = vpop.permute.xlu0 %836 }
  0xe8   : > { %795 = vst.msk [vmem:[#allocation3 + $0x1c] sm:$0xf] %vm787_vm5, %v778_v7  ;;  %vm1760_vm5 = vcmask 585184  }
  0xe9   : > { %857 = vst.msk [vmem:[#allocation3 + $0x10] sm:$0xf] %vm852_vm6, %v837_v51 }
  0xeb   : > { %v839_v1 = vpop.permute.xlu1 %838  ;;  %v841_v5 = vpop.permute.xlu0 %840 }
  0xec   : > { %858 = vst.msk [vmem:[#allocation3 + $0x14] sm:$0xf] %vm852_vm6, %v839_v1  ;;  %859 = vst.msk [vmem:[#allocation3 + $0x18] sm:$0xf] %vm852_vm6, %v841_v5 }
  0xef   : > { %v843_v3 = vpop.permute.xlu1 %842  ;;  %v910_v10 = vpop.permute.xlu0 %909 }
  0xf0   : > { %860 = vst.msk [vmem:[#allocation3 + $0x1c] sm:$0xf] %vm852_vm6, %v843_v3  ;;  %vm1833_vm6 = vcmask 683584  }
  0xf1   : > { %930 = vst.msk [vmem:[#allocation3 + $0x10] sm:$0xf] %vm925_vm7, %v910_v10 }
  0xf3   : > { %v912_v28 = vpop.permute.xlu1 %911  ;;  %v914_v26 = vpop.permute.xlu0 %913 }
  0xf4   : > { %931 = vst.msk [vmem:[#allocation3 + $0x14] sm:$0xf] %vm925_vm7, %v912_v28  ;;  %932 = vst.msk [vmem:[#allocation3 + $0x18] sm:$0xf] %vm925_vm7, %v914_v26 }
  0xf7   : > { %v916_v35 = vpop.permute.xlu1 %915  ;;  %v983_v38 = vpop.permute.xlu0 %982 }
  0xf8   : > { %933 = vst.msk [vmem:[#allocation3 + $0x1c] sm:$0xf] %vm925_vm7, %v916_v35  ;;  %vm1898_vm7 = vcmask 781984  }
  0xf9   : > { %1003 = vst.msk [vmem:[#allocation3 + $0x10] sm:$0xf] %vm998_vm8, %v983_v38 }
  0xfb   : > { %v985_v20 = vpop.permute.xlu1 %984  ;;  %v987_v31 = vpop.permute.xlu0 %986 }
  0xfc   : > { %1004 = vst.msk [vmem:[#allocation3 + $0x14] sm:$0xf] %vm998_vm8, %v985_v20  ;;  %1005 = vst.msk [vmem:[#allocation3 + $0x18] sm:$0xf] %vm998_vm8, %v987_v31 }
  0xff   : > { %v989_v40 = vpop.permute.xlu1 %988  ;;  %v1048_v15 = vpop.permute.xlu0 %1047 }
 0x100   : > { %1006 = vst.msk [vmem:[#allocation3 + $0x1c] sm:$0xf] %vm998_vm8, %v989_v40  ;;  %vm1971_vm8 = vcmask 880384  }
 0x101   : > { %1068 = vst.msk [vmem:[#allocation3 + $0x10] sm:$0xf] %vm1063_vm9, %v1048_v15 }
 0x103   : > { %v1050_v32 = vpop.permute.xlu1 %1049  ;;  %v1052_v47 = vpop.permute.xlu0 %1051 }
 0x104   : > { %1069 = vst.msk [vmem:[#allocation3 + $0x14] sm:$0xf] %vm1063_vm9, %v1050_v32  ;;  %1070 = vst.msk [vmem:[#allocation3 + $0x18] sm:$0xf] %vm1063_vm9, %v1052_v47 }
 0x107   : > { %v1054_v41 = vpop.permute.xlu1 %1053  ;;  %v1121_v22 = vpop.permute.xlu0 %1120 }
 0x108   : > { %1071 = vst.msk [vmem:[#allocation3 + $0x1c] sm:$0xf] %vm1063_vm9, %v1054_v41  ;;  %vm2070_vm9 = vcmask 883712  }
 0x109   : > { %1141 = vst.msk [vmem:[#allocation3 + $0x10] sm:$0xf] %vm1136_vm10, %v1121_v22 }
 0x10b   : > { %v1123_v34 = vpop.permute.xlu1 %1122  ;;  %v1125_v42 = vpop.permute.xlu0 %1124 }
 0x10c   : > { %1142 = vst.msk [vmem:[#allocation3 + $0x14] sm:$0xf] %vm1136_vm10, %v1123_v34  ;;  %1143 = vst.msk [vmem:[#allocation3 + $0x18] sm:$0xf] %vm1136_vm10, %v1125_v42 }
 0x10f   : > { %v1127_v9 = vpop.permute.xlu1 %1126  ;;  %v1331_v56 = vpop.permute.xlu0 %1330 }
 0x110   : > { %1144 = vst.msk [vmem:[#allocation3 + $0x1c] sm:$0xf] %vm1136_vm10, %v1127_v9  ;;  %vm2184_vm10 = vcmask 60416  }
 0x113   : > { %v2717_v43 = vld [vmem:[#allocation3 + $0x10] sm:$0xff]   ;;  %v1335_v17 = vpop.permute.xlu0 %1334  ;;  %v1333_v13 = vpop.permute.xlu1 %1332 }
 0x114   : > { %2661 = vmatprep.mubr.msk.bf16.mxu0 %vm1193_vm11, %v2717_v43 }
 0x117   : > { %v2718_v44 = vld [vmem:[#allocation3 + $0x18] sm:$0xff]   ;;  %v3254_v52 = vpop.permute.xlu0 %1338  ;;  %v1337_v10 = vpop.permute.xlu1 %1336 }
 0x118   : > { %2662 = vmatmul.mubr.msk.bf16.gmra.mxu0 %vm1193_vm11, %v2718_v44 }
 0x11b   : > { %v3261_v0 = vpop.permute.xlu0 %1342 }
 0x135   : > { %v1453_v14 = vpop.permute.xlu0 %1452 }
 0x136   : > { %1477 = vst.msk [vmem:[#allocation5] sm:$0xf] %vm1476_vm13, %v1453_v14 }
 0x19c   : > { %v2659_v54 = vpop.f32.mrf.mxu0 }
 0x19d   : > { %v1284_v57 = vmul.f32 %v2659_v54, %v3259_v25 }
 0x19e   : > { %v1244_v60 = vpop.f32.mrf.mxu0 }
 0x19f   : > { %v1299_v63 = vadd.f32 %v3267_v39, %v1284_v57  ;;  %v1282_v12 = vmul.f32 %v3259_v25, %v1244_v60 }
 0x1a0   : > { %v2660_v62 = vpop.f32.mrf.mxu0 }
 0x1a1   : > { %v1307_v2 = vmax.f32 %v1299_v63, 0.0  ;;  %v1297_v16 = vadd.f32 %v3267_v39, %v1282_v12  ;;  %v1285_v24 = vmul.f32 %v2660_v62, %v3259_v25 }
 0x1a2   : > { %v1247_v6 = vpop.f32.mrf.mxu0 }
 0x1a3   : > { %v1305_v7 = vmax.f32 %v1297_v16, 0.0  ;;  %1316 = vst.msk [vmem:[#allocation4 + $0x20] sm:$0xff] %vm1313_vm15, %v1307_v2  ;;  %v1300_v51 = vadd.f32 %v3267_v39, %v1285_v24  ;;  %v1283_v1 = vmul.f32 %v3259_v25, %v1247_v6 }
 0x1a4   : > { %1357 = vst.msk [vmem:[#allocation4 + $0x20] sm:$0xff] %vm1354_vm0, %v1335_v17 }
 0x1a5   : > { %1314 = vst.msk [vmem:[#allocation4 + $0x10] sm:$0xff] %vm1313_vm15, %v1305_v7  ;;  %v1308_v5 = vmax.f32 %v1300_v51, 0.0  ;;  %v1298_v3 = vadd.f32 %v3267_v39, %v1283_v1 }
 0x1a6   : > { %1355 = vst.msk [vmem:[#allocation4 + $0x10] sm:$0xff] %vm1354_vm0, %v1331_v56 }
 0x1a7   : > { %1317 = vst.msk [vmem:[#allocation4 + $0x28] sm:$0xff] %vm1313_vm15, %v1308_v5  ;;  %v1306_v28 = vmax.f32 %v1298_v3, 0.0 }
 0x1a8   : > { %1358 = vst.msk [vmem:[#allocation4 + $0x28] sm:$0xff] %vm1354_vm0, %v1337_v10 }
 0x1a9   : > { %1315 = vst.msk [vmem:[#allocation4 + $0x18] sm:$0xff] %vm1313_vm15, %v1306_v28 }
 0x1aa   : > { %1356 = vst.msk [vmem:[#allocation4 + $0x18] sm:$0xff] %vm1354_vm0, %v1333_v13 }
 0x1ab   : > { %v1633_v26 = vld [vmem:[#allocation4 + $0x20] sm:$0xff] }
 0x1ac   : > { %v2568_v35 = vpack.c.bf16 %v1633_v26, %v1633_v26 }
 0x1ad   : > { %v1631_v38 = vld [vmem:[#allocation4 + $0x10] sm:$0xff] }
 0x1ae   : > { %v1485_v20 = vld [vmem:[#allocation4 + $0x9] sm:$0xff]  ;;  %1667 = vrot.lane.b32.xlu0 %v2568_v35, %s2748_s11  ;;  %1458 = vrot.lane.b32.xlu1 %v2568_v35, %s2742_s26  ;;  %v2566_v31 = vpack.c.bf16 %v1631_v38, %v1631_v38 }
 0x1af   : > { %v1493_v40 = vmul.f32 %v2882_v50, %v1485_v20  ;;  %v1558_v15 = vld [vmem:[#allocation4 + $0xf] sm:$0xff]  ;;  %v1488_v34 = vld [vmem:[#allocation4 + $0x21] sm:$0xff] }
 0x1b0   : > { %v1634_v47 = vld [vmem:[#allocation4 + $0x28] sm:$0xff]  ;;  %v1566_v41 = vmul.f32 %v2916_v11, %v1558_v15  ;;  %v1372_v22 = vmul.f32 %v2925_v18, %v1558_v15  ;;  %v1496_v53 = vmul.f32 %v2911_v8, %v1488_v34  ;;  %v1916_v13 = vmul.f32 %v2896_v59, %v1488_v34 }
 0x1b1   : > { %v2550_v32 = vpack.c.bf16 %v1493_v40, %v1493_v40  ;;  %v1770_v42 = vld [vmem:[#allocation4 + $0x1f] sm:$0xff]  ;;  %v2569_v9 = vpack.c.bf16 %v1634_v47, %v1634_v47  ;;  %v1561_v43 = vld [vmem:[#allocation4 + $0x27] sm:$0xff]  ;;  %v3296_v44 = vld [vmem:[#allocation4 + $0x17] sm:$0xff]  ;;  %v1706_v14 = vmul.f32 %v2899_v61, %v1488_v34 }
 0x1b2   : > { %1876 = vrot.lane.b32.xlu1 %v2568_v35, %s2747_s24  ;;  %1663 = vrot.lane.b32.xlu0 %v2566_v31, %s2748_s11  ;;  %v2558_v30 = vpack.c.bf16 %v1566_v41, %v1566_v41  ;;  %v1374_v45 = vmul.f32 %v2935_v29, %v1770_v42  ;;  %v2535_v46 = vpack.c.bf16 %v1372_v22, %v1372_v22  ;;  %v1632_v63 = vld [vmem:[#allocation4 + $0x18] sm:$0xff]  ;;  %v1341_v41 = vpop.permute.xlu1 %1340 }
 0x1b3   : > { %v1375_v56 = vmul.f32 %v2999_v37, %v1561_v43  ;;  %v1373_v17 = vmul.f32 %v2928_v21, %v3296_v44  ;;  %v2553_v57 = vpack.c.bf16 %v1496_v53, %v1496_v53  ;;  %v1569_v58 = vmul.f32 %v2935_v29, %v1561_v43  ;;  %v1486_v62 = vld [vmem:[#allocation4 + $0x11] sm:$0xff]  ;;  %v1697_v5 = vld [vmem:[#allocation4 + $0x19] sm:$0xff] }
 0x1b4   : > { %v2537_v19 = vpack.c.bf16 %v1374_v45, %v1374_v45  ;;  %1413 = vst.msk [vmem:[#allocation5 + $0x4] sm:$0xf] %vm1411_vm14, %v2535_v46  ;;  %v2567_v12 = vpack.c.bf16 %v1632_v63, %v1632_v63  ;;  %v2599_v2 = vpack.c.bf16 %v1916_v13, %v1916_v13  ;;  %v2576_v16 = vpack.c.bf16 %v1706_v14, %v1706_v14 }
 0x1b5   : > { %v2538_v33 = vpack.c.bf16 %v1375_v56, %v1375_v56  ;;  %v2536_v54 = vpack.c.bf16 %v1373_v17, %v1373_v17  ;;  %v2561_v60 = vpack.c.bf16 %v1569_v58, %v1569_v58  ;;  %v1494_v24 = vmul.f32 %v2896_v59, %v1486_v62 }
 0x1b6   : > { %1525 = vrot.lane.b32.xlu0 %v2550_v32, %s2744_s28  ;;  %1454 = vrot.lane.b32.xlu1 %v2566_v31, %s2742_s26  ;;  %1415 = vst.msk [vmem:[#allocation5 + $0xc] sm:$0xf] %vm1411_vm14, %v2537_v19  ;;  %v1779_v6 = vmul.f32 %v2928_v21, %v1561_v43  ;;  %v1567_v1 = vmul.f32 %v2925_v18, %v3296_v44 }
 0x1b7   : > { %1416 = vst.msk [vmem:[#allocation5 + $0x10] sm:$0xf] %vm1411_vm14, %v2538_v33  ;;  %1414 = vst.msk [vmem:[#allocation5 + $0x8] sm:$0xf] %vm1411_vm14, %v2536_v54  ;;  %v2551_v7 = vpack.c.bf16 %v1494_v24, %v1494_v24  ;;  %v1705_v10 = vmul.f32 %v2896_v59, %v1697_v5  ;;  %v1495_v28 = vmul.f32 %v2899_v61, %v1697_v5  ;;  %v1345_v33 = vpop.permute.xlu1 %1344 }
 0x1b8   : > { %v2584_v51 = vpack.c.bf16 %v1779_v6, %v1779_v6  ;;  %v2559_v3 = vpack.c.bf16 %v1567_v1, %v1567_v1  ;;  %v1778_v38 = vmul.f32 %v2925_v18, %v1770_v42  ;;  %v1568_v20 = vmul.f32 %v2928_v21, %v1770_v42 }
 0x1b9   : > { %v2575_v26 = vpack.c.bf16 %v1705_v10, %v1705_v10  ;;  %v2552_v35 = vpack.c.bf16 %v1495_v28, %v1495_v28  ;;  %v1704_v59 = vmul.f32 %v2882_v50, %v1486_v62  ;;  %v1777_v42 = vmul.f32 %v2916_v11, %v3296_v44 }
 0x1ba   : > { %1598 = vrot.lane.b32.xlu0 %v2558_v30, %s2749_s12  ;;  %1669 = vrot.lane.b32.xlu1 %v2569_v9, %s2748_s11  ;;  %v2583_v40 = vpack.c.bf16 %v1778_v38, %v1778_v38  ;;  %v2560_v15 = vpack.c.bf16 %v1568_v20, %v1568_v20  ;;  %v1915_v11 = vmul.f32 %v2882_v50, %v1697_v5 }
 0x1bb   : > { %v2574_v34 = vpack.c.bf16 %v1704_v59, %v1704_v59  ;;  %v2582_v17 = vpack.c.bf16 %v1777_v42, %v1777_v42 }
 0x1be   : > { %1878 = vrot.lane.b32.xlu0 %v2569_v9, %s2747_s24  ;;  %1531 = vrot.lane.b32.xlu1 %v2553_v57, %s2744_s28 }
 0x1c2   : > { %1604 = vrot.lane.b32.xlu1 %v2561_v60, %s2749_s12  ;;  %1460 = vrot.lane.b32.xlu0 %v2569_v9, %s2742_s26 }
 0x1c6   : > { %1665 = vrot.lane.b32.xlu1 %v2567_v12, %s2748_s11  ;;  %1456 = vrot.lane.b32.xlu0 %v2567_v12, %s2742_s26 }
 0x1ca   : > { %1949 = vrot.lane.b32.xlu1 %v2599_v2, %s2750_s16  ;;  %1740 = vrot.lane.b32.xlu0 %v2576_v16, %s2751_s17 }
 0x1ce   : > { %1527 = vrot.lane.b32.xlu1 %v2551_v7, %s2744_s28  ;;  %1813 = vrot.lane.b32.xlu0 %v2584_v51, %s2752_s18 }
 0x1d2   : > { %1600 = vrot.lane.b32.xlu1 %v2559_v3, %s2749_s12  ;;  %1874 = vrot.lane.b32.xlu0 %v2567_v12, %s2747_s24 }
 0x1d6   : > { %1738 = vrot.lane.b32.xlu1 %v2575_v26, %s2751_s17  ;;  %1529 = vrot.lane.b32.xlu0 %v2552_v35, %s2744_s28 }
 0x1d8   : > { %v2663_v31 = vpop.f32.mrf.mxu0 }
 0x1d9   : > { %v1288_v32 = vmul.f32 %v2663_v31, %v3259_v25 }
 0x1da   : > { %1811 = vrot.lane.b32.xlu1 %v2583_v40, %s2752_s18  ;;  %1602 = vrot.lane.b32.xlu0 %v2560_v15, %s2749_s12  ;;  %v1260_v47 = vpop.f32.mrf.mxu0 }
 0x1db   : > { %v1303_v18 = vadd.f32 %v3267_v39, %v1288_v32  ;;  %v1286_v21 = vmul.f32 %v3259_v25, %v1260_v47  ;;  %v2721_v32 = vld [vmem:[%s3570_s8 + $0x28] sm:$0xff]  }
 0x1dc   : > { %v2664_v22 = vpop.f32.mrf.mxu0 }
 0x1dd   : > { %v1311_v9 = vmax.f32 %v1303_v18, 0.0  ;;  %v1301_v43 = vadd.f32 %v3267_v39, %v1286_v21  ;;  %v1289_v30 = vmul.f32 %v2664_v22, %v3259_v25 }
 0x1de   : > { %1736 = vrot.lane.b32.xlu0 %v2574_v34, %s2751_s17  ;;  %v1263_v53 = vpop.f32.mrf.mxu0  ;;  %v2722_v34 = vld [vmem:[%s3570_s8 + $0x20] sm:$0xff]  }
 0x1df   : > { %1320 = vst.msk [vmem:[#allocation4 + $0x40] sm:$0xff] %vm1313_vm15, %v1311_v9  ;;  %v1309_v45 = vmax.f32 %v1301_v43, 0.0  ;;  %v1304_v46 = vadd.f32 %v3267_v39, %v1289_v30  ;;  %v1287_v56 = vmul.f32 %v3259_v25, %v1263_v53 }
 0x1e0   : > { %1361 = vst.msk [vmem:[#allocation4 + $0x40] sm:$0xff] %vm1354_vm0, %v3261_v0  ;;  %v2598_v0 = vpack.c.bf16 %v1915_v11, %v1915_v11 }
 0x1e1   : > { %1318 = vst.msk [vmem:[#allocation4 + $0x30] sm:$0xff] %vm1313_vm15, %v1309_v45  ;;  %v1312_v44 = vmax.f32 %v1304_v46, 0.0  ;;  %v1302_v19 = vadd.f32 %v3267_v39, %v1287_v56  ;;  %v2723_v46 = vld [vmem:[%s3570_s8 + $0x18] sm:$0xff]  }
 0x1e2   : > { %1359 = vst.msk [vmem:[#allocation4 + $0x30] sm:$0xff] %vm1354_vm0, %v3254_v52  ;;  %1809 = vrot.lane.b32.xlu0 %v2582_v17, %s2752_s18  ;;  %v2724_v17 = vld [vmem:[%s3570_s8 + $0x10] sm:$0xff]  }
 0x1e3   : > { %1321 = vst.msk [vmem:[#allocation4 + $0x48] sm:$0xff] %vm1313_vm15, %v1312_v44  ;;  %v1310_v25 = vmax.f32 %v1302_v19, 0.0 }
 0x1e4   : > { %1362 = vst.msk [vmem:[#allocation4 + $0x48] sm:$0xff] %vm1354_vm0, %v1345_v33 }
 0x1e5   : > { %1319 = vst.msk [vmem:[#allocation4 + $0x38] sm:$0xff] %vm1313_vm15, %v1310_v25 }
 0x1e6   : > { %1360 = vst.msk [vmem:[#allocation4 + $0x38] sm:$0xff] %vm1354_vm0, %v1341_v41  ;;  %1947 = vrot.lane.b32.xlu0 %v2598_v0, %s2750_s16  ;;  %v2725_v0 = vld [vmem:[%s3570_s8 + $0x8] sm:$0xff]  }
 0x1e7   : > { %v1637_v50 = vld [vmem:[#allocation4 + $0x40] sm:$0xff] }
 0x1e8   : > { %v2572_v39 = vpack.c.bf16 %v1637_v50, %v1637_v50 }
 0x1e9   : > { %v1635_v54 = vld [vmem:[#allocation4 + $0x30] sm:$0xff] }
 0x1ea   : > { %v1909_v57 = vld [vmem:[#allocation4 + $0x29] sm:$0xff]  ;;  %1675 = vrot.lane.b32.xlu0 %v2572_v39, %s2748_s11  ;;  %1466 = vrot.lane.b32.xlu1 %v2572_v39, %s2742_s26  ;;  %v2570_v52 = vpack.c.bf16 %v1635_v54, %v1635_v54 }
 0x1eb   : > { %v1917_v58 = vmul.f32 %v2899_v61, %v1909_v57  ;;  %v1497_v63 = vmul.f32 %v3056_v23, %v1909_v57  ;;  %v1562_v12 = vld [vmem:[#allocation4 + $0x2f] sm:$0xff]  ;;  %v1707_v2 = vmul.f32 %v2911_v8, %v1909_v57  ;;  %v1492_v20 = vld [vmem:[#allocation4 + $0x41] sm:$0xff] }
 0x1ec   : > { %v1376_v13 = vmul.f32 %v2996_v36, %v1562_v12  ;;  %v1570_v62 = vmul.f32 %v2999_v37, %v1562_v12  ;;  %v1848_v24 = vld [vmem:[#allocation4 + $0x48] sm:$0xff]  ;;  %v1780_v5 = vmul.f32 %v2935_v29, %v1562_v12  ;;  %v2720_v29 = vld [vmem:[%s3570_s8 + $0x30] sm:$0x3f]   ;;  %v1500_v40 = vmul.f32 %v3082_v55, %v1492_v20 }
 0x1ed   : > { %v2600_v60 = vpack.c.bf16 %v1917_v58, %v1917_v58  ;;  %v2554_v14 = vpack.c.bf16 %v1497_v63, %v1497_v63  ;;  %v3372_v61 = vld [vmem:[#allocation4 + $0x3f] sm:$0xff]  ;;  %v3374_v16 = vld [vmem:[#allocation4 + $0x37] sm:$0xff]  ;;  %v2577_v1 = vpack.c.bf16 %v1707_v2, %v1707_v2  ;;  %v2596_v28 = vpack.c.bf16 %v1848_v24, %v1848_v24  ;;  %2688 = vmatprep.subr.msk.bf16.mxu1 %vm2083_vm1, %v2720_v29  ;;  %v1565_v47 = vld [vmem:[#allocation4 + $0x47] sm:$0xff]  ;;  %v3439_v63 = vpop.permute.xlu1 %1888 }
 0x1ee   : > { %1884 = vrot.lane.b32.xlu1 %v2572_v39, %s2747_s24  ;;  %1671 = vrot.lane.b32.xlu0 %v2570_v52, %s2748_s11  ;;  %v1378_v6 = vmul.f32 %v3027_v48, %v3372_v61  ;;  %v2539_v7 = vpack.c.bf16 %v1376_v13, %v1376_v13  ;;  %v2562_v51 = vpack.c.bf16 %v1570_v62, %v1570_v62  ;;  %v1426_v38 = vld [vmem:[#allocation4 + $0x38] sm:$0xff]  ;;  %v2085_v59 = vsel %vm2083_vm1, %v2720_v29, 0  ;;  %v1703_v43 = vld [vmem:[#allocation4 + $0x49] sm:$0xff] }
 0x1ef   : > { %v1377_v3 = vmul.f32 %v3030_v49, %v3374_v16  ;;  %v2585_v35 = vpack.c.bf16 %v1780_v5, %v1780_v5  ;;  %v2548_v31 = vpack.c.bf16 %v1426_v38, %v1426_v38  ;;  %v1710_v15 = vmul.f32 %v3071_v4, %v1492_v20  ;;  %2666 = vmatpush3.bf16.msra.mxu1 %v2085_v59  ;;  %v1491_v30 = vld [vmem:[#allocation4 + $0x39] sm:$0xff]  ;;  %v1776_v56 = vld [vmem:[#allocation4 + $0x4f] sm:$0xff] }
 0x1f0   : > { %v2541_v10 = vpack.c.bf16 %v1378_v6, %v1378_v6  ;;  %1417 = vst.msk [vmem:[#allocation5 + $0x14] sm:$0xf] %vm1411_vm14, %v2539_v7  ;;  %2667 = vmatprep.subr.bf16.mxu1 %v2721_v32  ;;  %v2557_v18 = vpack.c.bf16 %v1500_v40, %v1500_v40  ;;  %v1573_v41 = vmul.f32 %v3027_v48, %v1565_v47  ;;  %v1700_v25 = vld [vmem:[#allocation4 + $0x31] sm:$0xff] }
 0x1f1   : > { %v2540_v26 = vpack.c.bf16 %v1377_v3, %v1377_v3  ;;  %v2580_v21 = vpack.c.bf16 %v1710_v15, %v1710_v15  ;;  %v1783_v22 = vmul.f32 %v3030_v49, %v1565_v47  ;;  %v1711_v53 = vmul.f32 %v3082_v55, %v1703_v43 }
 0x1f2   : > { %1880 = vrot.lane.b32.xlu1 %v2570_v52, %s2747_s24  ;;  %1951 = vrot.lane.b32.xlu0 %v2600_v60, %s2750_s16  ;;  %1419 = vst.msk [vmem:[#allocation5 + $0x1c] sm:$0xf] %vm1411_vm14, %v2541_v10  ;;  %v2565_v42 = vpack.c.bf16 %v1573_v41, %v1573_v41  ;;  %v1499_v45 = vmul.f32 %v3071_v4, %v1491_v30 }
 0x1f3   : > { %1418 = vst.msk [vmem:[#allocation5 + $0x18] sm:$0xf] %vm1411_vm14, %v2540_v26  ;;  %2668 = vmatpush3.bf16.msra.mxu1 %v2721_v32  ;;  %v2588_v9 = vpack.c.bf16 %v1783_v22, %v1783_v22  ;;  %v2581_v11 = vpack.c.bf16 %v1711_v53, %v1711_v53  ;;  %v1784_v19 = vmul.f32 %v3027_v48, %v1776_v56 }
 0x1f4   : > { %2669 = vmatprep.subr.bf16.mxu1 %v2722_v34  ;;  %v2556_v44 = vpack.c.bf16 %v1499_v45, %v1499_v45  ;;  %v1572_v33 = vmul.f32 %v3030_v49, %v3372_v61  ;;  %v1920_v54 = vmul.f32 %v3068_v27, %v1492_v20  ;;  %v1708_v48 = vmul.f32 %v3056_v23, %v1700_v25  ;;  %v2726_v49 = vld [vmem:[%s3570_s8] sm:$0xff]  }
 0x1f5   : > { %v2589_v50 = vpack.c.bf16 %v1784_v19, %v1784_v19  ;;  %v1918_v58 = vmul.f32 %v2911_v8, %v1700_v25  ;;  %v1781_v60 = vmul.f32 %v2999_v37, %v3374_v16  ;;  %v1919_v62 = vmul.f32 %v3056_v23, %v1491_v30 }
 0x1f6   : > { %1533 = vrot.lane.b32.xlu0 %v2554_v14, %s2744_s28  ;;  %1462 = vrot.lane.b32.xlu1 %v2570_v52, %s2742_s26  ;;  %v2564_v39 = vpack.c.bf16 %v1572_v33, %v1572_v33  ;;  %v2603_v57 = vpack.c.bf16 %v1920_v54, %v1920_v54  ;;  %v2578_v52 = vpack.c.bf16 %v1708_v48, %v1708_v48 }
 0x1f7   : > { %2670 = vmatpush3.bf16.msra.mxu1 %v2722_v34  ;;  %v2601_v12 = vpack.c.bf16 %v1918_v58, %v1918_v58  ;;  %v2586_v13 = vpack.c.bf16 %v1781_v60, %v1781_v60  ;;  %v1498_v14 = vmul.f32 %v3068_v27, %v1700_v25  ;;  %v2602_v24 = vpack.c.bf16 %v1919_v62, %v1919_v62 }
 0x1f8   : > { %2671 = vmatprep.subr.bf16.mxu1 %v2723_v46  ;;  %v1571_v6 = vmul.f32 %v2996_v36, %v3374_v16  ;;  %v1921_v7 = vmul.f32 %v3071_v4, %v1703_v43  ;;  %v1709_v3 = vmul.f32 %v3068_v27, %v1491_v30  ;;  %v1914_v16 = vld [vmem:[#allocation4 + $0x51] sm:$0xff]  ;;  %v1782_v26 = vmul.f32 %v2996_v36, %v3372_v61 }
 0x1f9   : > { %v2555_v2 = vpack.c.bf16 %v1498_v14, %v1498_v14  ;;  %v1922_v27 = vmul.f32 %v3082_v55, %v1914_v16 }
 0x1fa   : > { %1606 = vrot.lane.b32.xlu0 %v2562_v51, %s2749_s12  ;;  %1742 = vrot.lane.b32.xlu1 %v2577_v1, %s2751_s17  ;;  %v2563_v1 = vpack.c.bf16 %v1571_v6, %v1571_v6  ;;  %v2604_v5 = vpack.c.bf16 %v1921_v7, %v1921_v7  ;;  %v2587_v20 = vpack.c.bf16 %v1782_v26, %v1782_v26  ;;  %v2434_v26 = vld [vmem:[%s3571_s9] ss:$0 sm:$0xff] }
 0x1fb   : > { %2672 = vmatpush3.bf16.msra.mxu1 %v2723_v46  ;;  %v2605_v29 = vpack.c.bf16 %v1922_v27, %v1922_v27 }
 0x1fc   : > { %2673 = vmatprep.subr.bf16.mxu1 %v2724_v17 }
 0x1fe   : > { %1815 = vrot.lane.b32.xlu1 %v2585_v35, %s2752_s18  ;;  %1886 = vrot.lane.b32.xlu0 %v2596_v28, %s2747_s24 }
 0x1ff   : > { %2674 = vmatpush3.bf16.msra.mxu1 %v2724_v17 }
 0x200   : > { %2675 = vmatprep.subr.bf16.mxu1 %v2725_v0 }
 0x202   : > { %1677 = vrot.lane.b32.xlu1 %v2596_v28, %s2748_s11  ;;  %1464 = vrot.lane.b32.xlu0 %v2548_v31, %s2742_s26  ;;  %v2579_v28 = vpack.c.bf16 %v1709_v3, %v1709_v3 }
 0x203   : > { %2676 = vmatpush3.bf16.msra.mxu1 %v2725_v0 }
 0x204   : > { %2677 = vmatprep.subr.bf16.mxu1 %v2726_v49 }
 0x206   : > { %1539 = vrot.lane.b32.xlu1 %v2557_v18, %s2744_s28  ;;  %1748 = vrot.lane.b32.xlu0 %v2580_v21, %s2751_s17 }
 0x207   : > { %2678 = vmatpush3.bf16.msra.mxu1 %v2726_v49 }
 0x20a   : > { %1612 = vrot.lane.b32.xlu1 %v2565_v42, %s2749_s12  ;;  %1821 = vrot.lane.b32.xlu0 %v2588_v9, %s2752_s18 }
 0x20e   : > { %1673 = vrot.lane.b32.xlu1 %v2548_v31, %s2748_s11  ;;  %1882 = vrot.lane.b32.xlu0 %v2548_v31, %s2747_s24 }
 0x212   : > { %1750 = vrot.lane.b32.xlu1 %v2581_v11, %s2751_s17  ;;  %1537 = vrot.lane.b32.xlu0 %v2556_v44, %s2744_s28 }
 0x216   : > { %1823 = vrot.lane.b32.xlu1 %v2589_v50, %s2752_s18  ;;  %1610 = vrot.lane.b32.xlu0 %v2564_v39, %s2749_s12 }
 0x21a   : > { %1957 = vrot.lane.b32.xlu1 %v2603_v57, %s2750_s16  ;;  %1744 = vrot.lane.b32.xlu0 %v2578_v52, %s2751_s17 }
 0x21e   : > { %1953 = vrot.lane.b32.xlu1 %v2601_v12, %s2750_s16  ;;  %1817 = vrot.lane.b32.xlu0 %v2586_v13, %s2752_s18 }
 0x220   : > { %v3445_v8 = vpop.permute.xlu0 %1667  ;;  %v1459_v37 = vpop.permute.xlu1 %1458 }
 0x221   : > { %1480 = vst.msk [vmem:[#allocation5 + $0xc] sm:$0xf] %vm1476_vm13, %v1459_v37 }
 0x222   : > { %1535 = vrot.lane.b32.xlu1 %v2555_v2, %s2744_s28  ;;  %1955 = vrot.lane.b32.xlu0 %v2602_v24, %s2750_s16 }
 0x224   : > { %v1877_v23 = vpop.permute.xlu1 %1876  ;;  %v1664_v51 = vpop.permute.xlu0 %1663 }
 0x226   : > { %1608 = vrot.lane.b32.xlu1 %v2563_v1, %s2749_s12  ;;  %1959 = vrot.lane.b32.xlu0 %v2604_v5, %s2750_s16 }
 0x228   : > { %v1526_v10 = vpop.permute.xlu0 %1525  ;;  %v1455_v4 = vpop.permute.xlu1 %1454 }
 0x229   : > { %1550 = vst.msk [vmem:[#allocation5] sm:$0xf] %vm1549_vm2, %v1526_v10 }
 0x22a   : > { %1478 = vst.msk [vmem:[#allocation5 + $0x4] sm:$0xf] %vm1476_vm13, %v1455_v4  ;;  %1746 = vrot.lane.b32.xlu1 %v2579_v28, %s2751_s17 }
 0x22c   : > { %v1599_v35 = vpop.permute.xlu0 %1598  ;;  %v1670_v38 = vpop.permute.xlu1 %1669 }
 0x22d   : > { %1623 = vst.msk [vmem:[#allocation5] sm:$0xf] %vm1622_vm3, %v1599_v35 }
 0x22e   : > { %1819 = vrot.lane.b32.xlu1 %v2587_v20, %s2752_s18  ;;  %1688 = vst.msk [vmem:[#allocation5] sm:$0xf] %vm1687_vm4, %v1664_v51  ;;  %s3541_s18 = scalar_lea.vmem %s3572_s10, %s2460_s15 }
 0x230   : > { %v1879_v36 = vpop.permute.xlu0 %1878  ;;  %v1532_v61 = vpop.permute.xlu1 %1531 }
 0x231   : > { %1553 = vst.msk [vmem:[#allocation5 + $0xc] sm:$0xf] %vm1549_vm2, %v1532_v61 }
 0x232   : > { %1961 = vrot.lane.b32.xlu1 %v2605_v29, %s2750_s16 }
 0x234   : > { %v1605_v31 = vpop.permute.xlu1 %1604  ;;  %v1461_v40 = vpop.permute.xlu0 %1460 }
 0x235   : > { %1626 = vst.msk [vmem:[#allocation5 + $0xc] sm:$0xf] %vm1622_vm3, %v1605_v31 }
 0x236   : > { %1481 = vst.msk [vmem:[#allocation5 + $0x10] sm:$0xf] %vm1476_vm13, %v1461_v40 }
 0x237   : > { %1691 = vst.msk [vmem:[#allocation5 + $0xc] sm:$0xf] %vm1687_vm4, %v1670_v38 }
 0x238   : > { %v1666_v55 = vpop.permute.xlu1 %1665  ;;  %v1457_v15 = vpop.permute.xlu0 %1456 }
 0x239   : > { %1479 = vst.msk [vmem:[#allocation5 + $0x8] sm:$0xf] %vm1476_vm13, %v1457_v15 }
 0x23c   : > { %v1950_v59 = vpop.permute.xlu1 %1949  ;;  %v1741_v32 = vpop.permute.xlu0 %1740 }
 0x240   : > { %v1528_v47 = vpop.permute.xlu1 %1527  ;;  %v1814_v18 = vpop.permute.xlu0 %1813 }
 0x241   : > { %1551 = vst.msk [vmem:[#allocation5 + $0x4] sm:$0xf] %vm1549_vm2, %v1528_v47 }
 0x244   : > { %v1601_v21 = vpop.permute.xlu1 %1600  ;;  %v1875_v41 = vpop.permute.xlu0 %1874 }
 0x245   : > { %1624 = vst.msk [vmem:[#allocation5 + $0x4] sm:$0xf] %vm1622_vm3, %v1601_v21 }
 0x246   : > { %1689 = vst.msk [vmem:[#allocation5 + $0x4] sm:$0xf] %vm1687_vm4, %v1666_v55 }
 0x248   : > { %v1739_v22 = vpop.permute.xlu1 %1738  ;;  %v1530_v34 = vpop.permute.xlu0 %1529 }
 0x249   : > { %1762 = vst.msk [vmem:[#allocation5 + $0x4] sm:$0xf] %vm1760_vm5, %v1739_v22 }
 0x24a   : > { %1552 = vst.msk [vmem:[#allocation5 + $0x8] sm:$0xf] %vm1549_vm2, %v1530_v34 }
 0x24c   : > { %v1812_v42 = vpop.permute.xlu1 %1811  ;;  %v1603_v9 = vpop.permute.xlu0 %1602 }
 0x24d   : > { %1835 = vst.msk [vmem:[#allocation5 + $0x4] sm:$0xf] %vm1833_vm6, %v1812_v42 }
 0x24e   : > { %1625 = vst.msk [vmem:[#allocation5 + $0x8] sm:$0xf] %vm1622_vm3, %v1603_v9 }
 0x24f   : > { %1900 = vst.msk [vmem:[#allocation5 + $0x4] sm:$0xf] %vm1898_vm7, %v1877_v23 }
 0x250   : > { %1690 = vst.msk [vmem:[#allocation5 + $0x8] sm:$0xf] %vm1687_vm4, %v3445_v8  ;;  %v1737_v43 = vpop.permute.xlu0 %1736 }
 0x251   : > { %1973 = vst.msk [vmem:[#allocation5 + $0x4] sm:$0xf] %vm1971_vm8, %v1950_v59 }
 0x252   : > { %1763 = vst.msk [vmem:[#allocation5 + $0x8] sm:$0xf] %vm1760_vm5, %v1741_v32  ;;  %1761 = vst.msk [vmem:[#allocation5] sm:$0xf] %vm1760_vm5, %v1737_v43 }
 0x253   : > { %1836 = vst.msk [vmem:[#allocation5 + $0x8] sm:$0xf] %vm1833_vm6, %v1814_v18 }
 0x254   : > { %1901 = vst.msk [vmem:[#allocation5 + $0x8] sm:$0xf] %vm1898_vm7, %v1879_v36  ;;  %v1810_v30 = vpop.permute.xlu0 %1809 }
 0x255   : > { %1834 = vst.msk [vmem:[#allocation5] sm:$0xf] %vm1833_vm6, %v1810_v30 }
 0x256   : > { %1899 = vst.msk [vmem:[#allocation5] sm:$0xf] %vm1898_vm7, %v1875_v41 }
 0x258   : > { %v1948_v53 = vpop.permute.xlu0 %1947 }
 0x259   : > { %1972 = vst.msk [vmem:[#allocation5] sm:$0xf] %vm1971_vm8, %v1948_v53 }
 0x25c   : > { %v1676_v45 = vpop.permute.xlu0 %1675  ;;  %v1467_v46 = vpop.permute.xlu1 %1466 }
 0x25d   : > { %1484 = vst.msk [vmem:[#allocation5 + $0x1c] sm:$0xf] %vm1476_vm13, %v1467_v46 }
 0x260   : > { %v3490_v56 = vpop.permute.xlu1 %1884  ;;  %v1672_v17 = vpop.permute.xlu0 %1671  ;;  %v2719_v11 = vld [vmem:[#allocation5] sm:$0xff]  }
 0x261   : > { %2679 = vmatprep.mubr.msk.bf16.mxu1 %vm2070_vm9, %v2719_v11 }
 0x264   : > { %v1881_v44 = vpop.permute.xlu1 %1880  ;;  %v1952_v19 = vpop.permute.xlu0 %1951 }
 0x265   : > { %1974 = vst.msk [vmem:[#allocation5 + $0x8] sm:$0xf] %vm1971_vm8, %v1952_v19 }
 0x268   : > { %v1534_v33 = vpop.permute.xlu0 %1533  ;;  %v1463_v25 = vpop.permute.xlu1 %1462 }
 0x269   : > { %1554 = vst.msk [vmem:[#allocation5 + $0x10] sm:$0xf] %vm1549_vm2, %v1534_v33 }
 0x26a   : > { %1482 = vst.msk [vmem:[#allocation5 + $0x14] sm:$0xf] %vm1476_vm13, %v1463_v25 }
 0x26c   : > { %v1607_v0 = vpop.permute.xlu0 %1606  ;;  %v1743_v50 = vpop.permute.xlu1 %1742 }
 0x26d   : > { %1627 = vst.msk [vmem:[#allocation5 + $0x10] sm:$0xf] %vm1622_vm3, %v1607_v0 }
 0x26e   : > { %1764 = vst.msk [vmem:[#allocation5 + $0xc] sm:$0xf] %vm1760_vm5, %v1743_v50 }
 0x26f   : > { %1692 = vst.msk [vmem:[#allocation5 + $0x10] sm:$0xf] %vm1687_vm4, %v1672_v17 }
 0x270   : > { %v1816_v39 = vpop.permute.xlu1 %1815  ;;  %v1887_v54 = vpop.permute.xlu0 %1886 }
 0x271   : > { %1837 = vst.msk [vmem:[#allocation5 + $0xc] sm:$0xf] %vm1833_vm6, %v1816_v39 }
 0x272   : > { %1902 = vst.msk [vmem:[#allocation5 + $0xc] sm:$0xf] %vm1898_vm7, %v1881_v44 }
 0x274   : > { %v1678_v48 = vpop.permute.xlu1 %1677  ;;  %v1465_v49 = vpop.permute.xlu0 %1464 }
 0x275   : > { %1483 = vst.msk [vmem:[#allocation5 + $0x18] sm:$0xf] %vm1476_vm13, %v1465_v49 }
 0x278   : > { %v1540_v57 = vpop.permute.xlu1 %1539  ;;  %v1749_v52 = vpop.permute.xlu0 %1748 }
 0x279   : > { %1557 = vst.msk [vmem:[#allocation5 + $0x1c] sm:$0xf] %vm1549_vm2, %v1540_v57 }
 0x27c   : > { %v1613_v58 = vpop.permute.xlu1 %1612  ;;  %v1822_v60 = vpop.permute.xlu0 %1821 }
 0x27d   : > { %1630 = vst.msk [vmem:[#allocation5 + $0x1c] sm:$0xf] %vm1622_vm3, %v1613_v58 }
 0x27e   : > { %1695 = vst.msk [vmem:[#allocation5 + $0x1c] sm:$0xf] %vm1687_vm4, %v1678_v48 }
 0x280   : > { %v1674_v12 = vpop.permute.xlu1 %1673  ;;  %v1883_v13 = vpop.permute.xlu0 %1882 }
 0x284   : > { %v1751_v14 = vpop.permute.xlu1 %1750  ;;  %v1538_v62 = vpop.permute.xlu0 %1537 }
 0x285   : > { %1768 = vst.msk [vmem:[#allocation5 + $0x1c] sm:$0xf] %vm1760_vm5, %v1751_v14 }
 0x286   : > { %1556 = vst.msk [vmem:[#allocation5 + $0x18] sm:$0xf] %vm1549_vm2, %v1538_v62 }
 0x288   : > { %v1824_v8 = vpop.permute.xlu1 %1823  ;;  %v1611_v37 = vpop.permute.xlu0 %1610 }
 0x289   : > { %1841 = vst.msk [vmem:[#allocation5 + $0x1c] sm:$0xf] %vm1833_vm6, %v1824_v8 }
 0x28a   : > { %1629 = vst.msk [vmem:[#allocation5 + $0x18] sm:$0xf] %vm1622_vm3, %v1611_v37 }
 0x28b   : > { %1906 = vst.msk [vmem:[#allocation5 + $0x1c] sm:$0xf] %vm1898_vm7, %v3439_v63 }
 0x28c   : > { %1694 = vst.msk [vmem:[#allocation5 + $0x18] sm:$0xf] %vm1687_vm4, %v1676_v45  ;;  %v1958_v2 = vpop.permute.xlu1 %1957  ;;  %v1745_v24 = vpop.permute.xlu0 %1744 }
 0x28d   : > { %1767 = vst.msk [vmem:[#allocation5 + $0x18] sm:$0xf] %vm1760_vm5, %v1749_v52  ;;  %1765 = vst.msk [vmem:[#allocation5 + $0x10] sm:$0xf] %vm1760_vm5, %v1745_v24 }
 0x28e   : > { %1840 = vst.msk [vmem:[#allocation5 + $0x18] sm:$0xf] %vm1833_vm6, %v1822_v60 }
 0x28f   : > { %1905 = vst.msk [vmem:[#allocation5 + $0x18] sm:$0xf] %vm1898_vm7, %v1887_v54 }
 0x290   : > { %v1954_v6 = vpop.permute.xlu1 %1953  ;;  %v1818_v7 = vpop.permute.xlu0 %1817 }
 0x291   : > { %1975 = vst.msk [vmem:[#allocation5 + $0xc] sm:$0xf] %vm1971_vm8, %v1954_v6 }
 0x292   : > { %1838 = vst.msk [vmem:[#allocation5 + $0x10] sm:$0xf] %vm1833_vm6, %v1818_v7 }
 0x293   : > { %1903 = vst.msk [vmem:[#allocation5 + $0x10] sm:$0xf] %vm1898_vm7, %v1883_v13 }
 0x294   : > { %v1536_v63 = vpop.permute.xlu1 %1535  ;;  %v1956_v23 = vpop.permute.xlu0 %1955 }
 0x295   : > { %1555 = vst.msk [vmem:[#allocation5 + $0x14] sm:$0xf] %vm1549_vm2, %v1536_v63 }
 0x296   : > { %1976 = vst.msk [vmem:[#allocation5 + $0x10] sm:$0xf] %vm1971_vm8, %v1956_v23 }
 0x298   : > { %v1609_v51 = vpop.permute.xlu1 %1608  ;;  %v1960_v1 = vpop.permute.xlu0 %1959  ;;  %v2727_v5 = vld [vmem:[#allocation5 + $0x8] sm:$0xff]  }
 0x299   : > { %1628 = vst.msk [vmem:[#allocation5 + $0x14] sm:$0xf] %vm1622_vm3, %v1609_v51  ;;  %2680 = vmatmul.mubr.msk.bf16.vlgmr.msra.gmra.mxu1 %vm2070_vm9, %v2727_v5 }
 0x29a   : > { %1978 = vst.msk [vmem:[#allocation5 + $0x18] sm:$0xf] %vm1971_vm8, %v1960_v1 }
 0x29b   : > { %1693 = vst.msk [vmem:[#allocation5 + $0x14] sm:$0xf] %vm1687_vm4, %v1674_v12 }
 0x29c   : > { %v1747_v3 = vpop.permute.xlu1 %1746 }
 0x29d   : > { %1766 = vst.msk [vmem:[#allocation5 + $0x14] sm:$0xf] %vm1760_vm5, %v1747_v3 }
 0x2a0   : > { %v1820_v16 = vpop.permute.xlu1 %1819 }
 0x2a1   : > { %1839 = vst.msk [vmem:[#allocation5 + $0x14] sm:$0xf] %vm1833_vm6, %v1820_v16 }
 0x2a2   : > { %1904 = vst.msk [vmem:[#allocation5 + $0x14] sm:$0xf] %vm1898_vm7, %v3490_v56 }
 0x2a3   : > { %1977 = vst.msk [vmem:[#allocation5 + $0x14] sm:$0xf] %vm1971_vm8, %v1958_v2 }
 0x2a4   : > { %v1962_v10 = vpop.permute.xlu1 %1961 }
 0x2a5   : > { %1979 = vst.msk [vmem:[#allocation5 + $0x1c] sm:$0xf] %vm1971_vm8, %v1962_v10 }
 0x2aa   : > { %v2728_v4 = vld [vmem:[#allocation5 + $0x10] sm:$0xff]  }
 0x2ab   : > { %2683 = vmatprep.mubr.msk.bf16.mxu1 %vm2070_vm9, %v2728_v4 }
 0x2ac   : > { %v2729_v28 = vld [vmem:[#allocation5 + $0x18] sm:$0xff]  }
 0x2ad   : > { %2684 = vmatmul.mubr.msk.bf16.gmra.mxu1 %vm2070_vm9, %v2729_v28 }
 0x359   : > { %v2681_v27 = vpop.f32.mrf.mxu1 }
 0x35a   : > { %v2130_v35 = vadd.f32 %v2681_v27, %v2434_v26 }
 0x35b   : > { %v2121_v38 = vpop.f32.mrf.mxu1 }
 0x35c   : > { %v2608_v20 = vpack.c.bf16 %v2130_v35, %v2130_v35  ;;  %v2122_v29 = vadd.f32 %v2434_v26, %v2121_v38 }
 0x35d   : > { %v2682_v36 = vpop.f32.mrf.mxu1 }
 0x35e   : > { %2187 = vst.msk [vmem:[%s3541_s18 + $0x8] sm:$0xf] %vm2184_vm10, %v2608_v20  ;;  %v2606_v61 = vpack.c.bf16 %v2122_v29, %v2122_v29  ;;  %v2133_v31 = vadd.f32 %v2682_v36, %v2434_v26 }
 0x35f   : > { %v2124_v40 = vpop.f32.mrf.mxu1 }
 0x360   : > { %2185 = vst.msk [vmem:[%s3541_s18] sm:$0xf] %vm2184_vm10, %v2606_v61  ;;  %v2609_v55 = vpack.c.bf16 %v2133_v31, %v2133_v31  ;;  %v2125_v15 = vadd.f32 %v2434_v26, %v2124_v40 }
 0x362   : > { %2188 = vst.msk [vmem:[%s3541_s18 + $0xc] sm:$0xf] %vm2184_vm10, %v2609_v55  ;;  %v2607_v59 = vpack.c.bf16 %v2125_v15, %v2125_v15 }
 0x364   : > { %2186 = vst.msk [vmem:[%s3541_s18 + $0x4] sm:$0xf] %vm2184_vm10, %v2607_v59 }
 0x36d   : > { %v2685_v32 = vpop.f32.mrf.mxu1 }
 0x36e   : > { %v2146_v47 = vadd.f32 %v2685_v32, %v2434_v26 }
 0x36f   : > { %v2137_v18 = vpop.f32.mrf.mxu1 }
 0x370   : > { %v2612_v21 = vpack.c.bf16 %v2146_v47, %v2146_v47  ;;  %v2138_v41 = vadd.f32 %v2434_v26, %v2137_v18 }
 0x371   : > { %v2686_v22 = vpop.f32.mrf.mxu1 }
 0x372   : > { %2191 = vst.msk [vmem:[%s3541_s18 + $0x18] sm:$0xf] %vm2184_vm10, %v2612_v21  ;;  %v2610_v34 = vpack.c.bf16 %v2138_v41, %v2138_v41  ;;  %v2149_v42 = vadd.f32 %v2686_v22, %v2434_v26 }
 0x373   : > { %v2140_v9 = vpop.f32.mrf.mxu1 }
 0x374   : > { %2189 = vst.msk [vmem:[%s3541_s18 + $0x10] sm:$0xf] %vm2184_vm10, %v2610_v34  ;;  %v2613_v43 = vpack.c.bf16 %v2149_v42, %v2149_v42  ;;  %v2141_v30 = vadd.f32 %v2434_v26, %v2140_v9 }
 0x376   : > { %2192 = vst.msk [vmem:[%s3541_s18 + $0x1c] sm:$0xf] %vm2184_vm10, %v2613_v43  ;;  %v2611_v53 = vpack.c.bf16 %v2141_v30, %v2141_v30 }
 0x378   : > { %2190 = vst.msk [vmem:[%s3541_s18 + $0x14] sm:$0xf] %vm2184_vm10, %v2611_v53 }
 0x379 PF: > { %s20_s13 = sadd.s32 1, %s2736_s13  }
 0x37a   : > { %p17_p4 = scmp.ge.s32.totalorder %s20_s13, 4  }
 0x37c   :  { %19 = sbr.rel (!%p17_p4) target bundleno = 1 (0x1), region = 90 }

</bundles_post_ra>
